<compile_context>
chip_gen: v6e
topology: v6e:2x2x1
jax: 0.10.0
libtpu: 0.0.40
codegen_flags: <defaults>
</compile_context>

<pallas_src>
import functools

import jax
import jax.numpy as jnp
from jax import lax
from jax.experimental import pallas as pl
from jax.experimental.pallas import tpu as pltpu

LN_EPS = 1e-5


def _layer_norm(x, gamma, beta):
    # x: (R, D) f32, gamma/beta: (1, D) f32 -> (R, D) f32
    mu = jnp.mean(x, axis=-1, keepdims=True)
    var = jnp.mean((x - mu) ** 2, axis=-1, keepdims=True)
    return (x - mu) * lax.rsqrt(var + LN_EPS) * gamma + beta


def _encoder_layer_kernel(
    num_heads, q_tile,
    # inputs
    x_ref, abias_ref,
    g1_ref, be1_ref,
    wqkv_ref, bqkv_ref, wo_ref, bo_ref,
    g2_ref, be2_ref,
    w1_ref, bf1_ref, w2_ref, bf2_ref,
    # outputs
    out_ref,
    # scratch (persists across grid steps)
    q_sc, k_sc, v_sc,
):
    qi = pl.program_id(1)
    T, D = q_sc.shape
    head_dim = D // num_heads
    cdt = q_sc.dtype                         # MXU operand (compute) dtype

    # ---- once per batch element: LN1 + fused QKV projection, cached in VMEM ----
    @pl.when(qi == 0)
    def _build_qkv():
        x_full = x_ref[0]                                          # (T, D) f32
        h1 = _layer_norm(x_full, g1_ref[...], be1_ref[...])
        qkv = jnp.dot(h1.astype(cdt), wqkv_ref[...],
                      preferred_element_type=jnp.float32) + bqkv_ref[...]
        scale = 1.0 / (head_dim ** 0.5)
        q_sc[...] = (qkv[:, :D] * scale).astype(cdt)   # fold 1/sqrt(hd) into Q once
        k_sc[...] = qkv[:, D:2 * D].astype(cdt)
        v_sc[...] = qkv[:, 2 * D:].astype(cdt)

    # ---- this query tile ----
    start = pl.multiple_of(qi * q_tile, q_tile)
    x_q = x_ref[0, pl.ds(start, q_tile), :]                        # (TQ, D) f32 residual rows
    q = q_sc[pl.ds(start, q_tile), :]                              # (TQ, D) cdt (pre-scaled)
    abias = abias_ref[0]                                           # (TQ, T) f32, shared by heads

    attn = jnp.zeros((q_tile, D), jnp.float32)
    for h in range(num_heads):          # static unroll; one head's (TQ, T) tile live at a time
        sl = slice(h * head_dim, (h + 1) * head_dim)
        qh = q[:, sl]                                              # (TQ, hd)
        kh = k_sc[:, sl]                                           # (T,  hd)
        vh = v_sc[:, sl]                                           # (T,  hd)
        scores = lax.dot_general(qh, kh, (((1,), (1,)), ((), ())),
                                 preferred_element_type=jnp.float32) + abias
        m = jnp.max(scores, axis=-1, keepdims=True)
        e = jnp.exp(scores - m)
        p = e * pl.reciprocal(jnp.sum(e, axis=-1, keepdims=True), approx=True)
        ctx = jnp.dot(p.astype(cdt), vh, preferred_element_type=jnp.float32)
        # accumulate straight into the output projection (no head concatenate)
        attn = attn + jnp.dot(ctx.astype(cdt), wo_ref[sl, :],
                              preferred_element_type=jnp.float32)
    attn = attn + bo_ref[...]

    x1 = x_q + attn                     # residual (residual_dropout = identity in eval)

    # ---- feed-forward block (pre-norm, linear -> ReLU -> linear) ----
    h2 = _layer_norm(x1, g2_ref[...], be2_ref[...])
    ff = jnp.dot(h2.astype(cdt), w1_ref[...], preferred_element_type=jnp.float32) + bf1_ref[...]
    ff = jnp.maximum(ff, 0.0)
    # TODO(synk): feed_forward_dropout / attention_dropout / residual_dropout omitted (eval-mode).
    ff = jnp.dot(ff.astype(cdt), w2_ref[...], preferred_element_type=jnp.float32) + bf2_ref[...]

    out_ref[0] = (x1 + ff).astype(out_ref.dtype)


def transformer_encoder_layer(inputs, attention_bias, params, *, num_heads,
                              batch_first=False, q_tile=None,
                              compute_dtype=jnp.bfloat16):
    """Forward pass of the pre-norm transformer encoder layer.

    inputs:         (T, B, D) when batch_first=False (module default), else (B, T, D).
    attention_bias: (B, T, T), added to every head's attention logits.
    """
    # NOTE: with batch_first=False the transpose costs one extra HBM round trip;
    # indexing the (T, B, D) layout directly would need a (TQ, 1, D) block whose
    # second-minor size (1) violates the (8, 128) block-alignment rule for B > 1,
    # so we keep the transpose and expose a zero-copy batch_first path instead.
    x = inputs if batch_first else jnp.transpose(inputs, (1, 0, 2))   # (B, T, D)
    B, T, D = x.shape
    F = params["w1"].shape[1]
    assert D % num_heads == 0

    if q_tile is None:
        q_tile = T if T <= 256 else 256
    assert T % q_tile == 0, "sequence length must be a multiple of the query tile"
    nq = T // q_tile

    # Fuse QKV weights/biases: one wide MXU matmul instead of three narrow ones.
    # (In a real model these would be pre-fused once, not per call.)
    wqkv = jnp.concatenate([params["wq"], params["wk"], params["wv"]], axis=1).astype(compute_dtype)
    bqkv = jnp.concatenate([params["bq"], params["bk"], params["bv"]], axis=1).astype(jnp.float32)
    wo = params["wo"].astype(compute_dtype)
    w1 = params["w1"].astype(compute_dtype)
    w2 = params["w2"].astype(compute_dtype)

    full2 = lambda shape: pl.BlockSpec(shape, lambda b, qi: (0, 0))

    # Rough VMEM working-set estimate; raise the scoped-VMEM limit only when needed.
    csize = jnp.dtype(compute_dtype).itemsize
    weight_bytes = (D * 3 * D + D * D + D * F + F * D) * csize
    bias_bytes = (3 * D + D + F + D + 4 * D) * 4
    act_bytes = 2 * (T * D + q_tile * T + q_tile * D) * 4      # double-buffered blocks
    scratch_bytes = 3 * T * D * csize
    est = 2 * weight_bytes + bias_bytes + act_bytes + scratch_bytes
    vmem_limit = None
    if est > 16 * 1024 * 1024:
        # On v7x (64 MiB VMEM) very large D/F additionally want a smaller q_tile
        # and/or K-tiled FFN weights; here we only raise the scoped limit.
        vmem_limit = min(int(est * 1.25), 100 * 1024 * 1024)

    # Advisory cost estimate so XLA schedules neighbouring ops around the call.
    flops = 2 * B * T * (3 * D * D          # fused QKV
                         + 2 * T * D        # scores + ctx (all heads)
                         + D * D            # output projection
                         + 2 * D * F)       # FFN
    transcendentals = B * num_heads * T * T + 2 * B * T   # softmax exp + LN rsqrt
    bytes_accessed = (2 * B * T * D * 4 + B * T * T * 4
                      + weight_bytes + bias_bytes)
    cost = pl.CostEstimate(flops=flops, transcendentals=transcendentals,
                           bytes_accessed=bytes_accessed)

    kernel = functools.partial(_encoder_layer_kernel, num_heads, q_tile)

    out = pl.pallas_call(
        kernel,
        out_shape=jax.ShapeDtypeStruct((B, T, D), inputs.dtype),
        grid_spec=pltpu.PrefetchScalarGridSpec(
            num_scalar_prefetch=0,
            grid=(B, nq),
            in_specs=[
                pl.BlockSpec((1, T, D), lambda b, qi: (b, 0, 0)),        # x (full seq / batch)
                pl.BlockSpec((1, q_tile, T), lambda b, qi: (b, qi, 0)),  # attention-bias tile
                full2((1, D)), full2((1, D)),                            # LN1 gamma/beta
                full2((D, 3 * D)), full2((1, 3 * D)),                    # fused Wqkv, bqkv
                full2((D, D)), full2((1, D)),                            # Wo, bo
                full2((1, D)), full2((1, D)),                            # LN2 gamma/beta
                full2((D, F)), full2((1, F)),                            # W1, b1
                full2((F, D)), full2((1, D)),                            # W2, b2
            ],
            out_specs=pl.BlockSpec((1, q_tile, D), lambda b, qi: (b, qi, 0)),
            scratch_shapes=[
                pltpu.VMEM((T, D), compute_dtype),   # Q cache (pre-scaled)
                pltpu.VMEM((T, D), compute_dtype),   # K cache
                pltpu.VMEM((T, D), compute_dtype),   # V cache
            ],
        ),
        compiler_params=pltpu.CompilerParams(
            dimension_semantics=("parallel", "arbitrary"),
            vmem_limit_bytes=vmem_limit,
        ),
        cost_estimate=cost,
    )(
        x, attention_bias,
        params["g1"], params["be1"],
        wqkv, bqkv, wo, params["bo"],
        params["g2"], params["be2"],
        w1, params["bf1"], w2, params["bf2"],
    )
    return out if batch_first else jnp.transpose(out, (1, 0, 2))


def _reference(inputs, attention_bias, params, *, num_heads, compute_dtype=jnp.bfloat16):
    """Plain-JAX reference with the same bf16-operand / f32-accumulation numerics."""
    cd = compute_dtype
    x = jnp.transpose(inputs, (1, 0, 2)).astype(jnp.float32)     # (B, T, D)
    B, T, D = x.shape
    hd = D // num_heads

    def ln(z, g, b):
        mu = jnp.mean(z, -1, keepdims=True)
        var = jnp.mean((z - mu) ** 2, -1, keepdims=True)
        return (z - mu) / jnp.sqrt(var + LN_EPS) * g + b

    def mm(a, w):
        return jnp.dot(a.astype(cd), w.astype(cd), preferred_element_type=jnp.float32)

    h = ln(x, params["g1"], params["be1"])
    q = ((mm(h, params["wq"]) + params["bq"]) * (1.0 / hd ** 0.5)).astype(cd)
    k = (mm(h, params["wk"]) + params["bk"]).astype(cd)
    v = (mm(h, params["wv"]) + params["bv"]).astype(cd)
    qh = q.reshape(B, T, num_heads, hd)
    kh = k.reshape(B, T, num_heads, hd)
    vh = v.reshape(B, T, num_heads, hd)
    scores = jnp.einsum("bthd,bshd->bhts", qh, kh, preferred_element_type=jnp.float32)
    scores = scores + attention_bias[:, None, :, :]
    p = jax.nn.softmax(scores, axis=-1)
    ctx = jnp.einsum("bhts,bshd->bthd", p.astype(cd), vh,
                     preferred_element_type=jnp.float32).reshape(B, T, D)
    x1 = x + mm(ctx, params["wo"]) + params["bo"]
    h2 = ln(x1, params["g2"], params["be2"])
    ff = jnp.maximum(mm(h2, params["w1"]) + params["bf1"], 0.0)
    out = x1 + mm(ff, params["w2"]) + params["bf2"]
    return jnp.transpose(out, (1, 0, 2))


def _init_params(key, D, F):
    ks = jax.random.split(key, 8)

    def lin(k, fan_in, shape):
        return (jax.random.normal(k, shape, jnp.float32) / (fan_in ** 0.5)).astype(jnp.float32)

    return {
        "g1": jnp.ones((1, D), jnp.float32), "be1": jnp.zeros((1, D), jnp.float32),
        "wq": lin(ks[0], D, (D, D)), "bq": jnp.zeros((1, D), jnp.float32),
        "wk": lin(ks[1], D, (D, D)), "bk": jnp.zeros((1, D), jnp.float32),
        "wv": lin(ks[2], D, (D, D)), "bv": jnp.zeros((1, D), jnp.float32),
        "wo": lin(ks[3], D, (D, D)), "bo": jnp.zeros((1, D), jnp.float32),
        "g2": jnp.ones((1, D), jnp.float32), "be2": jnp.zeros((1, D), jnp.float32),
        "w1": lin(ks[4], D, (D, F)), "bf1": jnp.zeros((1, F), jnp.float32),
        "w2": lin(ks[5], F, (F, D)), "bf2": jnp.zeros((1, D), jnp.float32),
    }


if __name__ == "__main__":
    T, B, D, H, F = 8, 2, 32, 4, 64   # seq, batch, model_dim, heads, ffn_dim

    key = jax.random.PRNGKey(0)
    k_in, k_bias, k_par = jax.random.split(key, 3)
    inputs = jax.random.normal(k_in, (T, B, D), jnp.float32)        # (seq, batch, dim)
    attention_bias = 0.1 * jax.random.normal(k_bias, (B, T, T), jnp.float32)
    params = _init_params(k_par, D, F)

    out = transformer_encoder_layer(inputs, attention_bias, params, num_heads=H)
    out = jax.block_until_ready(out)

    ref = _reference(inputs, attention_bias, params, num_heads=H)
    assert out.shape == (T, B, D)
    # bf16 MXU operands + approx softmax reciprocal => modest tolerance vs reference.
    assert jnp.allclose(out, ref, rtol=2e-2, atol=2e-2), "mismatch vs reference"
    print("KERNEL_OK")
</pallas_src>

<mosaic_0001>
module attributes {stable_mosaic.version = 11 : i64} {
  func.func @_encoder_layer_kernel(%arg0: i32, %arg1: i32, %arg2: memref<1x8x32xf32, #tpu.memory_space<vmem>>, %arg3: memref<1x8x8xf32, #tpu.memory_space<vmem>>, %arg4: memref<1x32xf32, #tpu.memory_space<vmem>>, %arg5: memref<1x32xf32, #tpu.memory_space<vmem>>, %arg6: memref<32x96xbf16, #tpu.memory_space<vmem>>, %arg7: memref<1x96xf32, #tpu.memory_space<vmem>>, %arg8: memref<32x32xbf16, #tpu.memory_space<vmem>>, %arg9: memref<1x32xf32, #tpu.memory_space<vmem>>, %arg10: memref<1x32xf32, #tpu.memory_space<vmem>>, %arg11: memref<1x32xf32, #tpu.memory_space<vmem>>, %arg12: memref<32x64xbf16, #tpu.memory_space<vmem>>, %arg13: memref<1x64xf32, #tpu.memory_space<vmem>>, %arg14: memref<64x32xbf16, #tpu.memory_space<vmem>>, %arg15: memref<1x32xf32, #tpu.memory_space<vmem>>, %arg16: memref<1x8x32xf32, #tpu.memory_space<vmem>>, %arg17: memref<8x32xbf16, #tpu.memory_space<vmem>>, %arg18: memref<8x32xbf16, #tpu.memory_space<vmem>>, %arg19: memref<8x32xbf16, #tpu.memory_space<vmem>>) attributes {dimension_semantics = [#tpu.dimension_semantics<parallel>, #tpu.dimension_semantics<arbitrary>], iteration_bounds = array<i64: 2, 1>, scalar_prefetch = 0 : i64, scratch_operands = 3 : i64, tpu.core_type = #tpu.core_type<tc>, window_params = [{transform_indices = @transform_0, window_bounds = array<i64: 1, 8, 32>}, {transform_indices = @transform_1, window_bounds = array<i64: 1, 8, 8>}, {pipeline_mode = #tpu.pipeline_mode<synchronous>, transform_indices = @transform_2, window_bounds = array<i64: 1, 32>}, {pipeline_mode = #tpu.pipeline_mode<synchronous>, transform_indices = @transform_3, window_bounds = array<i64: 1, 32>}, {pipeline_mode = #tpu.pipeline_mode<synchronous>, transform_indices = @transform_4, window_bounds = array<i64: 32, 96>}, {pipeline_mode = #tpu.pipeline_mode<synchronous>, transform_indices = @transform_5, window_bounds = array<i64: 1, 96>}, {pipeline_mode = #tpu.pipeline_mode<synchronous>, transform_indices = @transform_6, window_bounds = array<i64: 32, 32>}, {pipeline_mode = #tpu.pipeline_mode<synchronous>, transform_indices = @transform_7, window_bounds = array<i64: 1, 32>}, {pipeline_mode = #tpu.pipeline_mode<synchronous>, transform_indices = @transform_8, window_bounds = array<i64: 1, 32>}, {pipeline_mode = #tpu.pipeline_mode<synchronous>, transform_indices = @transform_9, window_bounds = array<i64: 1, 32>}, {pipeline_mode = #tpu.pipeline_mode<synchronous>, transform_indices = @transform_10, window_bounds = array<i64: 32, 64>}, {pipeline_mode = #tpu.pipeline_mode<synchronous>, transform_indices = @transform_11, window_bounds = array<i64: 1, 64>}, {pipeline_mode = #tpu.pipeline_mode<synchronous>, transform_indices = @transform_12, window_bounds = array<i64: 64, 32>}, {pipeline_mode = #tpu.pipeline_mode<synchronous>, transform_indices = @transform_13, window_bounds = array<i64: 1, 32>}, {transform_indices = @transform_14, window_bounds = array<i64: 1, 8, 32>}]} {
    %c0_i32 = arith.constant 0 : i32
    %0 = arith.cmpi eq, %arg1, %c0_i32 : i32
    %1 = arith.extui %0 : i1 to i32
    %c0_i32_0 = arith.constant 0 : i32
    %2 = arith.cmpi ne, %1, %c0_i32_0 : i32
    scf.if %2 {
      %c0_72 = arith.constant 0 : index
      %c0_73 = arith.constant 0 : index
      %c0_74 = arith.constant 0 : index
      %143 = vector.load %arg2[%c0_72, %c0_73, %c0_74] : memref<1x8x32xf32, #tpu.memory_space<vmem>>, vector<1x8x32xf32>
      %144 = vector.shape_cast %143 : vector<1x8x32xf32> to vector<8x32xf32>
      %c0_75 = arith.constant 0 : index
      %c0_76 = arith.constant 0 : index
      %145 = vector.load %arg4[%c0_75, %c0_76] : memref<1x32xf32, #tpu.memory_space<vmem>>, vector<1x32xf32>
      %c0_77 = arith.constant 0 : index
      %c0_78 = arith.constant 0 : index
      %146 = vector.load %arg5[%c0_77, %c0_78] : memref<1x32xf32, #tpu.memory_space<vmem>>, vector<1x32xf32>
      %cst_79 = arith.constant dense<0.000000e+00> : vector<8xf32>
      %147 = vector.multi_reduction <add>, %144, %cst_79 [1] : vector<8x32xf32> to vector<8xf32>
      %148 = vector.shape_cast %147 : vector<8xf32> to vector<8x1xf32>
      %cst_80 = arith.constant 3.200000e+01 : f32
      %149 = vector.broadcast %cst_80 : f32 to vector<8x1xf32>
      %150 = arith.divf %148, %149 : vector<8x1xf32>
      %151 = vector.broadcast %150 : vector<8x1xf32> to vector<8x32xf32>
      %152 = arith.subf %144, %151 : vector<8x32xf32>
      %153 = arith.mulf %152, %152 : vector<8x32xf32>
      %cst_81 = arith.constant dense<0.000000e+00> : vector<8xf32>
      %154 = vector.multi_reduction <add>, %153, %cst_81 [1] : vector<8x32xf32> to vector<8xf32>
      %155 = vector.shape_cast %154 : vector<8xf32> to vector<8x1xf32>
      %cst_82 = arith.constant 3.200000e+01 : f32
      %156 = vector.broadcast %cst_82 : f32 to vector<8x1xf32>
      %157 = arith.divf %155, %156 : vector<8x1xf32>
      %158 = vector.broadcast %150 : vector<8x1xf32> to vector<8x32xf32>
      %159 = arith.subf %144, %158 : vector<8x32xf32>
      %cst_83 = arith.constant 9.99999974E-6 : f32
      %160 = vector.broadcast %cst_83 : f32 to vector<8x1xf32>
      %161 = arith.addf %157, %160 : vector<8x1xf32>
      %162 = math.rsqrt %161 : vector<8x1xf32>
      %163 = vector.broadcast %162 : vector<8x1xf32> to vector<8x32xf32>
      %164 = arith.mulf %159, %163 : vector<8x32xf32>
      %165 = vector.broadcast %145 : vector<1x32xf32> to vector<8x32xf32>
      %166 = arith.mulf %164, %165 : vector<8x32xf32>
      %167 = vector.broadcast %146 : vector<1x32xf32> to vector<8x32xf32>
      %168 = arith.addf %166, %167 : vector<8x32xf32>
      %169 = arith.truncf %168 : vector<8x32xf32> to vector<8x32xbf16>
      %c0_84 = arith.constant 0 : index
      %c0_85 = arith.constant 0 : index
      %170 = vector.load %arg6[%c0_84, %c0_85] : memref<32x96xbf16, #tpu.memory_space<vmem>>, vector<32x96xbf16>
      %cst_86 = arith.constant dense<0.000000e+00> : vector<8x96xf32>
      %171 = tpu.matmul %169, %170, %cst_86 {dimension_numbers = #tpu.dot_dimension_numbers<[1], [0], [0], [1], [0, 0, 1, 1], [], []>} : vector<8x32xbf16>, vector<32x96xbf16>, vector<8x96xf32> -> vector<8x96xf32>
      %c0_87 = arith.constant 0 : index
      %c0_88 = arith.constant 0 : index
      %172 = vector.load %arg7[%c0_87, %c0_88] : memref<1x96xf32, #tpu.memory_space<vmem>>, vector<1x96xf32>
      %173 = vector.broadcast %172 : vector<1x96xf32> to vector<8x96xf32>
      %174 = arith.addf %171, %173 : vector<8x96xf32>
      %175 = vector.extract_strided_slice %174 {offsets = [0, 0], sizes = [8, 32], strides = [1, 1]} : vector<8x96xf32> to vector<8x32xf32>
      %cst_89 = arith.constant 0.353553385 : f32
      %176 = vector.broadcast %cst_89 : f32 to vector<8x32xf32>
      %177 = arith.mulf %175, %176 : vector<8x32xf32>
      %178 = arith.truncf %177 : vector<8x32xf32> to vector<8x32xbf16>
      %c0_90 = arith.constant 0 : index
      %c0_91 = arith.constant 0 : index
      %179 = vector.load %arg17[%c0_90, %c0_91] : memref<8x32xbf16, #tpu.memory_space<vmem>>, vector<8x32xbf16>
      tpu.vector_store %arg17[%c0_90, %c0_91], %178 {strides = array<i32>} : memref<8x32xbf16, #tpu.memory_space<vmem>>, vector<8x32xbf16>,
      %180 = vector.extract_strided_slice %174 {offsets = [0, 32], sizes = [8, 32], strides = [1, 1]} : vector<8x96xf32> to vector<8x32xf32>
      %181 = arith.truncf %180 : vector<8x32xf32> to vector<8x32xbf16>
      %c0_92 = arith.constant 0 : index
      %c0_93 = arith.constant 0 : index
      %182 = vector.load %arg18[%c0_92, %c0_93] : memref<8x32xbf16, #tpu.memory_space<vmem>>, vector<8x32xbf16>
      tpu.vector_store %arg18[%c0_92, %c0_93], %181 {strides = array<i32>} : memref<8x32xbf16, #tpu.memory_space<vmem>>, vector<8x32xbf16>,
      %183 = vector.extract_strided_slice %174 {offsets = [0, 64], sizes = [8, 32], strides = [1, 1]} : vector<8x96xf32> to vector<8x32xf32>
      %184 = arith.truncf %183 : vector<8x32xf32> to vector<8x32xbf16>
      %c0_94 = arith.constant 0 : index
      %c0_95 = arith.constant 0 : index
      %185 = vector.load %arg19[%c0_94, %c0_95] : memref<8x32xbf16, #tpu.memory_space<vmem>>, vector<8x32xbf16>
      tpu.vector_store %arg19[%c0_94, %c0_95], %184 {strides = array<i32>} : memref<8x32xbf16, #tpu.memory_space<vmem>>, vector<8x32xbf16>,
    } else {
    }
    %c8_i32 = arith.constant 8 : i32
    %3 = arith.muli %arg1, %c8_i32 : i32
    %4 = tpu.assume_multiple %3, 8 : i32
    %c0 = arith.constant 0 : index
    %5 = arith.index_cast %4 : i32 to index
    %c0_1 = arith.constant 0 : index
    %6 = vector.load %arg2[%c0, %5, %c0_1] : memref<1x8x32xf32, #tpu.memory_space<vmem>>, vector<1x8x32xf32>
    %7 = vector.shape_cast %6 : vector<1x8x32xf32> to vector<8x32xf32>
    %8 = arith.index_cast %4 : i32 to index
    %c0_2 = arith.constant 0 : index
    %9 = vector.load %arg17[%8, %c0_2] : memref<8x32xbf16, #tpu.memory_space<vmem>>, vector<8x32xbf16>
    %c0_3 = arith.constant 0 : index
    %c0_4 = arith.constant 0 : index
    %c0_5 = arith.constant 0 : index
    %10 = vector.load %arg3[%c0_3, %c0_4, %c0_5] : memref<1x8x8xf32, #tpu.memory_space<vmem>>, vector<1x8x8xf32>
    %11 = vector.shape_cast %10 : vector<1x8x8xf32> to vector<8x8xf32>
    %cst = arith.constant 0.000000e+00 : f32
    %12 = vector.broadcast %cst : f32 to vector<8x32xf32>
    %13 = vector.extract_strided_slice %9 {offsets = [0, 0], sizes = [8, 8], strides = [1, 1]} : vector<8x32xbf16> to vector<8x8xbf16>
    %c0_6 = arith.constant 0 : index
    %c0_7 = arith.constant 0 : index
    %14 = vector.load %arg18[%c0_6, %c0_7] : memref<8x32xbf16, #tpu.memory_space<vmem>>, vector<8x8xbf16>
    %c0_8 = arith.constant 0 : index
    %c0_9 = arith.constant 0 : index
    %15 = vector.load %arg19[%c0_8, %c0_9] : memref<8x32xbf16, #tpu.memory_space<vmem>>, vector<8x8xbf16>
    %cst_10 = arith.constant dense<0.000000e+00> : vector<8x8xf32>
    %16 = tpu.matmul %13, %14, %cst_10 {dimension_numbers = #tpu.dot_dimension_numbers<[1], [1], [0], [0], [0, 0, 1, 0], [], []>} : vector<8x8xbf16>, vector<8x8xbf16>, vector<8x8xf32> -> vector<8x8xf32>
    %17 = arith.addf %16, %11 : vector<8x8xf32>
    %cst_11 = arith.constant dense<0xFF800000> : vector<8xf32>
    %18 = vector.multi_reduction <maximumf>, %17, %cst_11 [1] : vector<8x8xf32> to vector<8xf32>
    %19 = vector.shape_cast %18 : vector<8xf32> to vector<8x1xf32>
    %20 = vector.broadcast %19 : vector<8x1xf32> to vector<8x8xf32>
    %21 = arith.subf %17, %20 : vector<8x8xf32>
    %22 = math.exp %21 : vector<8x8xf32>
    %cst_12 = arith.constant dense<0.000000e+00> : vector<8xf32>
    %23 = vector.multi_reduction <add>, %22, %cst_12 [1] : vector<8x8xf32> to vector<8xf32>
    %24 = vector.shape_cast %23 : vector<8xf32> to vector<8x1xf32>
    %25 = tpu.reciprocal %24 {approx = true} : vector<8x1xf32> -> vector<8x1xf32>
    %26 = vector.broadcast %25 : vector<8x1xf32> to vector<8x8xf32>
    %27 = arith.mulf %22, %26 : vector<8x8xf32>
    %28 = arith.truncf %27 : vector<8x8xf32> to vector<8x8xbf16>
    %cst_13 = arith.constant dense<0.000000e+00> : vector<8x8xf32>
    %29 = tpu.matmul %28, %15, %cst_13 {dimension_numbers = #tpu.dot_dimension_numbers<[1], [0], [0], [1], [0, 0, 1, 1], [], []>} : vector<8x8xbf16>, vector<8x8xbf16>, vector<8x8xf32> -> vector<8x8xf32>
    %30 = arith.truncf %29 : vector<8x8xf32> to vector<8x8xbf16>
    %c0_14 = arith.constant 0 : index
    %c0_15 = arith.constant 0 : index
    %31 = vector.load %arg8[%c0_14, %c0_15] : memref<32x32xbf16, #tpu.memory_space<vmem>>, vector<8x32xbf16>
    %cst_16 = arith.constant dense<0.000000e+00> : vector<8x32xf32>
    %32 = tpu.matmul %30, %31, %cst_16 {dimension_numbers = #tpu.dot_dimension_numbers<[1], [0], [0], [1], [0, 0, 1, 1], [], []>} : vector<8x8xbf16>, vector<8x32xbf16>, vector<8x32xf32> -> vector<8x32xf32>
    %33 = arith.addf %12, %32 : vector<8x32xf32>
    %34 = vector.extract_strided_slice %9 {offsets = [0, 8], sizes = [8, 8], strides = [1, 1]} : vector<8x32xbf16> to vector<8x8xbf16>
    %c0_17 = arith.constant 0 : index
    %c8 = arith.constant 8 : index
    %35 = vector.load %arg18[%c0_17, %c8] : memref<8x32xbf16, #tpu.memory_space<vmem>>, vector<8x8xbf16>
    %c0_18 = arith.constant 0 : index
    %c8_19 = arith.constant 8 : index
    %36 = vector.load %arg19[%c0_18, %c8_19] : memref<8x32xbf16, #tpu.memory_space<vmem>>, vector<8x8xbf16>
    %cst_20 = arith.constant dense<0.000000e+00> : vector<8x8xf32>
    %37 = tpu.matmul %34, %35, %cst_20 {dimension_numbers = #tpu.dot_dimension_numbers<[1], [1], [0], [0], [0, 0, 1, 0], [], []>} : vector<8x8xbf16>, vector<8x8xbf16>, vector<8x8xf32> -> vector<8x8xf32>
    %38 = arith.addf %37, %11 : vector<8x8xf32>
    %cst_21 = arith.constant dense<0xFF800000> : vector<8xf32>
    %39 = vector.multi_reduction <maximumf>, %38, %cst_21 [1] : vector<8x8xf32> to vector<8xf32>
    %40 = vector.shape_cast %39 : vector<8xf32> to vector<8x1xf32>
    %41 = vector.broadcast %40 : vector<8x1xf32> to vector<8x8xf32>
    %42 = arith.subf %38, %41 : vector<8x8xf32>
    %43 = math.exp %42 : vector<8x8xf32>
    %cst_22 = arith.constant dense<0.000000e+00> : vector<8xf32>
    %44 = vector.multi_reduction <add>, %43, %cst_22 [1] : vector<8x8xf32> to vector<8xf32>
    %45 = vector.shape_cast %44 : vector<8xf32> to vector<8x1xf32>
    %46 = tpu.reciprocal %45 {approx = true} : vector<8x1xf32> -> vector<8x1xf32>
    %47 = vector.broadcast %46 : vector<8x1xf32> to vector<8x8xf32>
    %48 = arith.mulf %43, %47 : vector<8x8xf32>
    %49 = arith.truncf %48 : vector<8x8xf32> to vector<8x8xbf16>
    %cst_23 = arith.constant dense<0.000000e+00> : vector<8x8xf32>
    %50 = tpu.matmul %49, %36, %cst_23 {dimension_numbers = #tpu.dot_dimension_numbers<[1], [0], [0], [1], [0, 0, 1, 1], [], []>} : vector<8x8xbf16>, vector<8x8xbf16>, vector<8x8xf32> -> vector<8x8xf32>
    %51 = arith.truncf %50 : vector<8x8xf32> to vector<8x8xbf16>
    %c8_24 = arith.constant 8 : index
    %c0_25 = arith.constant 0 : index
    %52 = vector.load %arg8[%c8_24, %c0_25] : memref<32x32xbf16, #tpu.memory_space<vmem>>, vector<8x32xbf16>
    %cst_26 = arith.constant dense<0.000000e+00> : vector<8x32xf32>
    %53 = tpu.matmul %51, %52, %cst_26 {dimension_numbers = #tpu.dot_dimension_numbers<[1], [0], [0], [1], [0, 0, 1, 1], [], []>} : vector<8x8xbf16>, vector<8x32xbf16>, vector<8x32xf32> -> vector<8x32xf32>
    %54 = arith.addf %33, %53 : vector<8x32xf32>
    %55 = vector.extract_strided_slice %9 {offsets = [0, 16], sizes = [8, 8], strides = [1, 1]} : vector<8x32xbf16> to vector<8x8xbf16>
    %c0_27 = arith.constant 0 : index
    %c16 = arith.constant 16 : index
    %56 = vector.load %arg18[%c0_27, %c16] : memref<8x32xbf16, #tpu.memory_space<vmem>>, vector<8x8xbf16>
    %c0_28 = arith.constant 0 : index
    %c16_29 = arith.constant 16 : index
    %57 = vector.load %arg19[%c0_28, %c16_29] : memref<8x32xbf16, #tpu.memory_space<vmem>>, vector<8x8xbf16>
    %cst_30 = arith.constant dense<0.000000e+00> : vector<8x8xf32>
    %58 = tpu.matmul %55, %56, %cst_30 {dimension_numbers = #tpu.dot_dimension_numbers<[1], [1], [0], [0], [0, 0, 1, 0], [], []>} : vector<8x8xbf16>, vector<8x8xbf16>, vector<8x8xf32> -> vector<8x8xf32>
    %59 = arith.addf %58, %11 : vector<8x8xf32>
    %cst_31 = arith.constant dense<0xFF800000> : vector<8xf32>
    %60 = vector.multi_reduction <maximumf>, %59, %cst_31 [1] : vector<8x8xf32> to vector<8xf32>
    %61 = vector.shape_cast %60 : vector<8xf32> to vector<8x1xf32>
    %62 = vector.broadcast %61 : vector<8x1xf32> to vector<8x8xf32>
    %63 = arith.subf %59, %62 : vector<8x8xf32>
    %64 = math.exp %63 : vector<8x8xf32>
    %cst_32 = arith.constant dense<0.000000e+00> : vector<8xf32>
    %65 = vector.multi_reduction <add>, %64, %cst_32 [1] : vector<8x8xf32> to vector<8xf32>
    %66 = vector.shape_cast %65 : vector<8xf32> to vector<8x1xf32>
    %67 = tpu.reciprocal %66 {approx = true} : vector<8x1xf32> -> vector<8x1xf32>
    %68 = vector.broadcast %67 : vector<8x1xf32> to vector<8x8xf32>
    %69 = arith.mulf %64, %68 : vector<8x8xf32>
    %70 = arith.truncf %69 : vector<8x8xf32> to vector<8x8xbf16>
    %cst_33 = arith.constant dense<0.000000e+00> : vector<8x8xf32>
    %71 = tpu.matmul %70, %57, %cst_33 {dimension_numbers = #tpu.dot_dimension_numbers<[1], [0], [0], [1], [0, 0, 1, 1], [], []>} : vector<8x8xbf16>, vector<8x8xbf16>, vector<8x8xf32> -> vector<8x8xf32>
    %72 = arith.truncf %71 : vector<8x8xf32> to vector<8x8xbf16>
    %c16_34 = arith.constant 16 : index
    %c0_35 = arith.constant 0 : index
    %73 = vector.load %arg8[%c16_34, %c0_35] : memref<32x32xbf16, #tpu.memory_space<vmem>>, vector<8x32xbf16>
    %cst_36 = arith.constant dense<0.000000e+00> : vector<8x32xf32>
    %74 = tpu.matmul %72, %73, %cst_36 {dimension_numbers = #tpu.dot_dimension_numbers<[1], [0], [0], [1], [0, 0, 1, 1], [], []>} : vector<8x8xbf16>, vector<8x32xbf16>, vector<8x32xf32> -> vector<8x32xf32>
    %75 = arith.addf %54, %74 : vector<8x32xf32>
    %76 = vector.extract_strided_slice %9 {offsets = [0, 24], sizes = [8, 8], strides = [1, 1]} : vector<8x32xbf16> to vector<8x8xbf16>
    %c0_37 = arith.constant 0 : index
    %c24 = arith.constant 24 : index
    %77 = vector.load %arg18[%c0_37, %c24] : memref<8x32xbf16, #tpu.memory_space<vmem>>, vector<8x8xbf16>
    %c0_38 = arith.constant 0 : index
    %c24_39 = arith.constant 24 : index
    %78 = vector.load %arg19[%c0_38, %c24_39] : memref<8x32xbf16, #tpu.memory_space<vmem>>, vector<8x8xbf16>
    %cst_40 = arith.constant dense<0.000000e+00> : vector<8x8xf32>
    %79 = tpu.matmul %76, %77, %cst_40 {dimension_numbers = #tpu.dot_dimension_numbers<[1], [1], [0], [0], [0, 0, 1, 0], [], []>} : vector<8x8xbf16>, vector<8x8xbf16>, vector<8x8xf32> -> vector<8x8xf32>
    %80 = arith.addf %79, %11 : vector<8x8xf32>
    %cst_41 = arith.constant dense<0xFF800000> : vector<8xf32>
    %81 = vector.multi_reduction <maximumf>, %80, %cst_41 [1] : vector<8x8xf32> to vector<8xf32>
    %82 = vector.shape_cast %81 : vector<8xf32> to vector<8x1xf32>
    %83 = vector.broadcast %82 : vector<8x1xf32> to vector<8x8xf32>
    %84 = arith.subf %80, %83 : vector<8x8xf32>
    %85 = math.exp %84 : vector<8x8xf32>
    %cst_42 = arith.constant dense<0.000000e+00> : vector<8xf32>
    %86 = vector.multi_reduction <add>, %85, %cst_42 [1] : vector<8x8xf32> to vector<8xf32>
    %87 = vector.shape_cast %86 : vector<8xf32> to vector<8x1xf32>
    %88 = tpu.reciprocal %87 {approx = true} : vector<8x1xf32> -> vector<8x1xf32>
    %89 = vector.broadcast %88 : vector<8x1xf32> to vector<8x8xf32>
    %90 = arith.mulf %85, %89 : vector<8x8xf32>
    %91 = arith.truncf %90 : vector<8x8xf32> to vector<8x8xbf16>
    %cst_43 = arith.constant dense<0.000000e+00> : vector<8x8xf32>
    %92 = tpu.matmul %91, %78, %cst_43 {dimension_numbers = #tpu.dot_dimension_numbers<[1], [0], [0], [1], [0, 0, 1, 1], [], []>} : vector<8x8xbf16>, vector<8x8xbf16>, vector<8x8xf32> -> vector<8x8xf32>
    %93 = arith.truncf %92 : vector<8x8xf32> to vector<8x8xbf16>
    %c24_44 = arith.constant 24 : index
    %c0_45 = arith.constant 0 : index
    %94 = vector.load %arg8[%c24_44, %c0_45] : memref<32x32xbf16, #tpu.memory_space<vmem>>, vector<8x32xbf16>
    %cst_46 = arith.constant dense<0.000000e+00> : vector<8x32xf32>
    %95 = tpu.matmul %93, %94, %cst_46 {dimension_numbers = #tpu.dot_dimension_numbers<[1], [0], [0], [1], [0, 0, 1, 1], [], []>} : vector<8x8xbf16>, vector<8x32xbf16>, vector<8x32xf32> -> vector<8x32xf32>
    %96 = arith.addf %75, %95 : vector<8x32xf32>
    %c0_47 = arith.constant 0 : index
    %c0_48 = arith.constant 0 : index
    %97 = vector.load %arg9[%c0_47, %c0_48] : memref<1x32xf32, #tpu.memory_space<vmem>>, vector<1x32xf32>
    %98 = vector.broadcast %97 : vector<1x32xf32> to vector<8x32xf32>
    %99 = arith.addf %96, %98 : vector<8x32xf32>
    %100 = arith.addf %7, %99 : vector<8x32xf32>
    %c0_49 = arith.constant 0 : index
    %c0_50 = arith.constant 0 : index
    %101 = vector.load %arg10[%c0_49, %c0_50] : memref<1x32xf32, #tpu.memory_space<vmem>>, vector<1x32xf32>
    %c0_51 = arith.constant 0 : index
    %c0_52 = arith.constant 0 : index
    %102 = vector.load %arg11[%c0_51, %c0_52] : memref<1x32xf32, #tpu.memory_space<vmem>>, vector<1x32xf32>
    %cst_53 = arith.constant dense<0.000000e+00> : vector<8xf32>
    %103 = vector.multi_reduction <add>, %100, %cst_53 [1] : vector<8x32xf32> to vector<8xf32>
    %104 = vector.shape_cast %103 : vector<8xf32> to vector<8x1xf32>
    %cst_54 = arith.constant 3.200000e+01 : f32
    %105 = vector.broadcast %cst_54 : f32 to vector<8x1xf32>
    %106 = arith.divf %104, %105 : vector<8x1xf32>
    %107 = vector.broadcast %106 : vector<8x1xf32> to vector<8x32xf32>
    %108 = arith.subf %100, %107 : vector<8x32xf32>
    %109 = arith.mulf %108, %108 : vector<8x32xf32>
    %cst_55 = arith.constant dense<0.000000e+00> : vector<8xf32>
    %110 = vector.multi_reduction <add>, %109, %cst_55 [1] : vector<8x32xf32> to vector<8xf32>
    %111 = vector.shape_cast %110 : vector<8xf32> to vector<8x1xf32>
    %cst_56 = arith.constant 3.200000e+01 : f32
    %112 = vector.broadcast %cst_56 : f32 to vector<8x1xf32>
    %113 = arith.divf %111, %112 : vector<8x1xf32>
    %114 = vector.broadcast %106 : vector<8x1xf32> to vector<8x32xf32>
    %115 = arith.subf %100, %114 : vector<8x32xf32>
    %cst_57 = arith.constant 9.99999974E-6 : f32
    %116 = vector.broadcast %cst_57 : f32 to vector<8x1xf32>
    %117 = arith.addf %113, %116 : vector<8x1xf32>
    %118 = math.rsqrt %117 : vector<8x1xf32>
    %119 = vector.broadcast %118 : vector<8x1xf32> to vector<8x32xf32>
    %120 = arith.mulf %115, %119 : vector<8x32xf32>
    %121 = vector.broadcast %101 : vector<1x32xf32> to vector<8x32xf32>
    %122 = arith.mulf %120, %121 : vector<8x32xf32>
    %123 = vector.broadcast %102 : vector<1x32xf32> to vector<8x32xf32>
    %124 = arith.addf %122, %123 : vector<8x32xf32>
    %125 = arith.truncf %124 : vector<8x32xf32> to vector<8x32xbf16>
    %c0_58 = arith.constant 0 : index
    %c0_59 = arith.constant 0 : index
    %126 = vector.load %arg12[%c0_58, %c0_59] : memref<32x64xbf16, #tpu.memory_space<vmem>>, vector<32x64xbf16>
    %cst_60 = arith.constant dense<0.000000e+00> : vector<8x64xf32>
    %127 = tpu.matmul %125, %126, %cst_60 {dimension_numbers = #tpu.dot_dimension_numbers<[1], [0], [0], [1], [0, 0, 1, 1], [], []>} : vector<8x32xbf16>, vector<32x64xbf16>, vector<8x64xf32> -> vector<8x64xf32>
    %c0_61 = arith.constant 0 : index
    %c0_62 = arith.constant 0 : index
    %128 = vector.load %arg13[%c0_61, %c0_62] : memref<1x64xf32, #tpu.memory_space<vmem>>, vector<1x64xf32>
    %129 = vector.broadcast %128 : vector<1x64xf32> to vector<8x64xf32>
    %130 = arith.addf %127, %129 : vector<8x64xf32>
    %cst_63 = arith.constant 0.000000e+00 : f32
    %131 = vector.broadcast %cst_63 : f32 to vector<8x64xf32>
    %132 = arith.maximumf %130, %131 : vector<8x64xf32>
    %133 = arith.truncf %132 : vector<8x64xf32> to vector<8x64xbf16>
    %c0_64 = arith.constant 0 : index
    %c0_65 = arith.constant 0 : index
    %134 = vector.load %arg14[%c0_64, %c0_65] : memref<64x32xbf16, #tpu.memory_space<vmem>>, vector<64x32xbf16>
    %cst_66 = arith.constant dense<0.000000e+00> : vector<8x32xf32>
    %135 = tpu.matmul %133, %134, %cst_66 {dimension_numbers = #tpu.dot_dimension_numbers<[1], [0], [0], [1], [0, 0, 1, 1], [], []>} : vector<8x64xbf16>, vector<64x32xbf16>, vector<8x32xf32> -> vector<8x32xf32>
    %c0_67 = arith.constant 0 : index
    %c0_68 = arith.constant 0 : index
    %136 = vector.load %arg15[%c0_67, %c0_68] : memref<1x32xf32, #tpu.memory_space<vmem>>, vector<1x32xf32>
    %137 = vector.broadcast %136 : vector<1x32xf32> to vector<8x32xf32>
    %138 = arith.addf %135, %137 : vector<8x32xf32>
    %139 = arith.addf %100, %138 : vector<8x32xf32>
    %c0_69 = arith.constant 0 : index
    %c0_70 = arith.constant 0 : index
    %c0_71 = arith.constant 0 : index
    %140 = vector.load %arg16[%c0_69, %c0_70, %c0_71] : memref<1x8x32xf32, #tpu.memory_space<vmem>>, vector<1x8x32xf32>
    %141 = vector.shape_cast %140 : vector<1x8x32xf32> to vector<8x32xf32>
    %142 = vector.shape_cast %139 : vector<8x32xf32> to vector<1x8x32xf32>
    tpu.vector_store %arg16[%c0_69, %c0_70, %c0_71], %142 {strides = array<i32>} : memref<1x8x32xf32, #tpu.memory_space<vmem>>, vector<1x8x32xf32>,
    return
  }
  func.func @transform_0(%arg0: i32, %arg1: i32) -> (i32, i32, i32) {
    %c0_i32 = arith.constant 0 : i32
    %c0_i32_0 = arith.constant 0 : i32
    %c0_i32_1 = arith.constant 0 : i32
    return %arg0, %c0_i32, %c0_i32_0 : i32, i32, i32
  }
  func.func @transform_1(%arg0: i32, %arg1: i32) -> (i32, i32, i32) {
    %c0_i32 = arith.constant 0 : i32
    %c0_i32_0 = arith.constant 0 : i32
    return %arg0, %arg1, %c0_i32 : i32, i32, i32
  }
  func.func @transform_2(%arg0: i32, %arg1: i32) -> (i32, i32) {
    %c0_i32 = arith.constant 0 : i32
    %c0_i32_0 = arith.constant 0 : i32
    %c0_i32_1 = arith.constant 0 : i32
    return %c0_i32, %c0_i32_0 : i32, i32
  }
  func.func @transform_3(%arg0: i32, %arg1: i32) -> (i32, i32) {
    %c0_i32 = arith.constant 0 : i32
    %c0_i32_0 = arith.constant 0 : i32
    %c0_i32_1 = arith.constant 0 : i32
    return %c0_i32, %c0_i32_0 : i32, i32
  }
  func.func @transform_4(%arg0: i32, %arg1: i32) -> (i32, i32) {
    %c0_i32 = arith.constant 0 : i32
    %c0_i32_0 = arith.constant 0 : i32
    %c0_i32_1 = arith.constant 0 : i32
    return %c0_i32, %c0_i32_0 : i32, i32
  }
  func.func @transform_5(%arg0: i32, %arg1: i32) -> (i32, i32) {
    %c0_i32 = arith.constant 0 : i32
    %c0_i32_0 = arith.constant 0 : i32
    %c0_i32_1 = arith.constant 0 : i32
    return %c0_i32, %c0_i32_0 : i32, i32
  }
  func.func @transform_6(%arg0: i32, %arg1: i32) -> (i32, i32) {
    %c0_i32 = arith.constant 0 : i32
    %c0_i32_0 = arith.constant 0 : i32
    %c0_i32_1 = arith.constant 0 : i32
    return %c0_i32, %c0_i32_0 : i32, i32
  }
  func.func @transform_7(%arg0: i32, %arg1: i32) -> (i32, i32) {
    %c0_i32 = arith.constant 0 : i32
    %c0_i32_0 = arith.constant 0 : i32
    %c0_i32_1 = arith.constant 0 : i32
    return %c0_i32, %c0_i32_0 : i32, i32
  }
  func.func @transform_8(%arg0: i32, %arg1: i32) -> (i32, i32) {
    %c0_i32 = arith.constant 0 : i32
    %c0_i32_0 = arith.constant 0 : i32
    %c0_i32_1 = arith.constant 0 : i32
    return %c0_i32, %c0_i32_0 : i32, i32
  }
  func.func @transform_9(%arg0: i32, %arg1: i32) -> (i32, i32) {
    %c0_i32 = arith.constant 0 : i32
    %c0_i32_0 = arith.constant 0 : i32
    %c0_i32_1 = arith.constant 0 : i32
    return %c0_i32, %c0_i32_0 : i32, i32
  }
  func.func @transform_10(%arg0: i32, %arg1: i32) -> (i32, i32) {
    %c0_i32 = arith.constant 0 : i32
    %c0_i32_0 = arith.constant 0 : i32
    %c0_i32_1 = arith.constant 0 : i32
    return %c0_i32, %c0_i32_0 : i32, i32
  }
  func.func @transform_11(%arg0: i32, %arg1: i32) -> (i32, i32) {
    %c0_i32 = arith.constant 0 : i32
    %c0_i32_0 = arith.constant 0 : i32
    %c0_i32_1 = arith.constant 0 : i32
    return %c0_i32, %c0_i32_0 : i32, i32
  }
  func.func @transform_12(%arg0: i32, %arg1: i32) -> (i32, i32) {
    %c0_i32 = arith.constant 0 : i32
    %c0_i32_0 = arith.constant 0 : i32
    %c0_i32_1 = arith.constant 0 : i32
    return %c0_i32, %c0_i32_0 : i32, i32
  }
  func.func @transform_13(%arg0: i32, %arg1: i32) -> (i32, i32) {
    %c0_i32 = arith.constant 0 : i32
    %c0_i32_0 = arith.constant 0 : i32
    %c0_i32_1 = arith.constant 0 : i32
    return %c0_i32, %c0_i32_0 : i32, i32
  }
  func.func @transform_14(%arg0: i32, %arg1: i32) -> (i32, i32, i32) {
    %c0_i32 = arith.constant 0 : i32
    %c0_i32_0 = arith.constant 0 : i32
    return %arg0, %arg1, %c0_i32 : i32, i32, i32
  }
}

</mosaic_0001>

<bundles_post_ra>
// kernel: tpu_custom_call.1
= control target key start
LH: loop header
LB: loop body
LE: loop exit
PB: predicated region body
PF: predicated region fallthrough
CT: control target
= control target key end

     0   :  { %s2831_s0 = inlined_call_operand.vmem [shape: f32[2,8,32], index: 0, kind: input, shape index: {}]   ;;  %s2832_s1 = inlined_call_operand.vmem [shape: f32[2,8,8], index: 1, kind: input, shape index: {}]   ;;  %s2833_s2 = inlined_call_operand.hbm [shape: f32[1,32], index: 2, kind: input, shape index: {}]   ;;  %s2834_s3 = inlined_call_operand.hbm [shape: f32[1,32], index: 3, kind: input, shape index: {}]   ;;  %s2835_s4 = inlined_call_operand.vmem [shape: bf16[32,96], index: 4, kind: input, shape index: {}]   ;;  %s2836_s5 = inlined_call_operand.hbm [shape: f32[1,96], index: 5, kind: input, shape index: {}]   ;;  %s2837_s6 = inlined_call_operand.hbm [shape: bf16[32,32], index: 6, kind: input, shape index: {}]   ;;  %s2838_s7 = inlined_call_operand.hbm [shape: f32[1,32], index: 7, kind: input, shape index: {}]   ;;  %s2839_s8 = inlined_call_operand.hbm [shape: f32[1,32], index: 8, kind: input, shape index: {}]   ;;  %s2840_s9 = inlined_call_operand.hbm [shape: f32[1,32], index: 9, kind: input, shape index: {}]   ;;  %s2841_s10 = inlined_call_operand.vmem [shape: bf16[32,64], index: 10, kind: input, shape index: {}]   ;;  %s2842_s11 = inlined_call_operand.vmem [shape: f32[1,64], index: 11, kind: input, shape index: {}]   ;;  %s2843_s12 = inlined_call_operand.vmem [shape: bf16[64,32], index: 12, kind: input, shape index: {}]   ;;  %s2844_s13 = inlined_call_operand.vmem [shape: f32[1,32], index: 13, kind: input, shape index: {}]   ;;  %s2845_s14 = inlined_call_operand.hbm [shape: f32[2,8,32], index: 14, kind: output, shape index: {}]  }
   0x1   :  { %2858 = sst [smem:[#allocation30_spill]] %s2834_s3 }
   0x2   :  { %2859 = sst [smem:[#allocation31_spill]] %s2845_s14 }
   0x3   :  { %19 = vsyncpa [#allocation6], 0 }
   0x4   :  { %20 = vsyncpa [#allocation9], 0 }
   0x5   :  { %21 = vsyncpa [#allocation12], 0 }
   0x6   :  { %22 = vsyncpa [#allocation15], 0 }
   0x7   :  { %23 = vsyncpa [#allocation7], 0 }
   0x8   :  { %25 = vsyncpa [#allocation7 + $0x1], 0  ;;  %s2461_s29 = smov 0   ;;  %s2463_s30 = smov 0  }
   0x9   :  { %s2465_s15 = smov 0   ;;  %s2467_s16 = smov 0  }
   0xa   :  { %s2469_s17 = smov 0   ;;  %s2471_s18 = smov 0  }
   0xb LB: > { %2860 = sst [smem:[#allocation23_spill]] %s2347_s29  ;;  %s1730_s19 = sadd.s32 4294967295, %s2367_s18   ;;  %s2367_s18 = sphi %s2471_s18, %s31_s18   ;;  %s2363_s17 = sphi %s2469_s17, %s2885_s17   ;;  %s2359_s16 = sphi %s2467_s16, %s2884_s16   ;;  %s2355_s15 = sphi %s2465_s15, %s2883_s15   ;;  %s2351_s30 = sphi %s2463_s30, %s2887_s30   ;;  %s2347_s29 = sphi %s2461_s29, %s2886_s29  }
   0xc   : > { %2861 = sst [smem:[#allocation24_spill]] %s2355_s15  ;;  %s1731_s20 = sadd.s32 4294967294, %s2367_s18  }
   0xd   : > { %2862 = sst [smem:[#allocation25_spill]] %s2363_s17  ;;  %s43_s21 = sadd.s32 1, %s2363_s17 }
   0xe   : > { %2863 = sst [smem:[#allocation26_spill]] %s2367_s18  ;;  %s358_s22 = sadd.s32 1, %s2355_s15 }
   0xf   : > { %p45_p0 = scmp.ge.s32.totalorder %s43_s21, 2  ;;  %p368_p1 = scmp.ne.s32.totalorder %s2355_s15, %s2351_s30 }
  0x10   : > { %p369_p2 = scmp.eq.s32.totalorder %s1730_s19, 1  ;;  %p374_p3 = scmp.ne.s32.totalorder %s2351_s30, %s2347_s29 }
  0x11   : > { %s2889_s21 = smov (%p45_p0, %s43_s21), 0  ;;  %p375_p5 = scmp.eq.s32.totalorder %s1731_s20, 1 }
  0x12   : > { %2864 = sst [smem:[#allocation27_spill]] %s2889_s21  ;;  %p2501_p4 = por %p369_p2, %p368_p1 }
  0x13   : > { %s353_s24 = ssub.s32 %s2363_s17, %s2889_s21  ;;  %p1732_p6 = scmp.ge.s32.totalorder %s2367_s18, 1 }
  0x14   : > { %s2865_s23 = scalar_select %p2501_p4, 1, 0 }
  0x15   : > { %p356_p7 = scmp.eq.s32.totalorder %s353_s24, 0  ;;  %p2508_p8 = por %p375_p5, %p374_p3 }
  0x16   : > { %p382_p9 = scmp.lt.s32.totalorder %s2367_s18, 3  ;;  %p2520_p11 = scmp.eq.s32.totalorder %s1730_s19, 0 }
  0x17   : > { %s2866_s25 = scalar_select %p2508_p8, 1, 0 }
  0x18   : > { %s2514_s26 = scalar_select %p356_p7, %s2355_s15, %s358_s22  }
  0x19   : > { %2867 = sst [smem:[#allocation28_spill]] %s2866_s25  ;;  %p2516_p10 = pnand %p1732_p6, %p382_p9 }
  0x1a   : > { %2868 = sst [smem:[#allocation29_spill]] %s2514_s26  ;;  %s2369_s20 = smov [#allocation8]  }
  0x1b   : > { %s2869_s27 = scalar_select %p2516_p10, 1, 0 }
  0x1c   : > { %s2870_s28 = scalar_select %p2520_p11, 1, 0 }
  0x1d   : > { %p1957_p12 = pneg %p2516_p10  ;;  %s406_s24 = sshll.u32 %s2369_s20, 4  ;;  %s407_s24 = int_to_ptr.vmem [resolvable:$true] %s406_s24 }
  0x1e   : > { %s2370_s21 = smov [#allocation11]   ;;  %s2104_s26 = scalar_lea.vmem %s407_s24, 16 }
  0x1f   : > { %s430_s17 = sshll.u32 %s2370_s21, 4  ;;  %p2528_p13 = pnand %p2520_p11, %p1957_p12  ;;  %s431_s17 = int_to_ptr.vmem [resolvable:$true] %s430_s17 }
  0x20   : > { %p2105_p1 = scmp.ne.s32.totalorder %s407_s24, %s2104_s26  ;;  %s2111_s20 = scalar_lea.vmem %s407_s24, 32 }
  0x21   : > { %p2534_p0 = pneg %p2528_p13  ;;  %p2112_p5 = scmp.lt.s32.totalorder %s407_s24, %s407_s24 }
  0x22   : > { %p2113_p6 = scmp.lt.s32.totalorder %s2111_s20, %s2104_s26 }
  0x23   : > { %p2107_p2 = pnand %p2105_p1, %p2534_p0 }
  0x24   : > { %p2114_p7 = por %p2113_p6, %p2112_p5 }
  0x25   : > { %p2108_p3 = pneg %p2107_p2 }
  0x27   : > { %p2115_p9 = pnand %p2114_p7, %p2108_p3 }
  0x29   : > { %2118 = shalt.err (!%p2115_p9)
}
  0x2a   : > { %s2873_s3 = sld [smem:[#allocation30_spill]]  ;;  %s2130_s25 = scalar_lea.vmem %s431_s17, 256 }
  0x2b   : > { %p2131_p12 = scmp.ne.s32.totalorder %s431_s17, %s2130_s25  ;;  %p2138_p1 = scmp.lt.s32.totalorder %s431_s17, %s431_s17 }
  0x2c   : > { %p2139_p2 = scmp.lt.s32.totalorder %s2130_s25, %s2130_s25 }
  0x2d   : > { %p2133_p8 = pnand %p2131_p12, %p2534_p0 }
  0x2e   : > { %p2140_p11 = por %p2139_p2, %p2138_p1 }
  0x2f   : > { %p2134_p4 = pneg %p2133_p8 }
  0x30   : > { %1963 = dma.hbm_to_vmem [thread:$0]  (!%p2528_p13), %s2873_s3, 16, %s407_s24, [#allocation9]  }
  0x31   : > { %p2141_p10 = pnand %p2140_p11, %p2134_p4 }
  0x33   : > { %2144 = shalt.err (!%p2141_p10)
}
  0x34   : > { %s2371_s26 = smov 64   ;;  %s2372_s20 = smov 4  }
  0x35   : > { %1969 = dma.hbm_to_vmem [thread:$0]  (!%p2528_p13), %s2837_s6, 256, %s431_s17, [#allocation12], %s2371_s26, %s2371_s26, %s2372_s20  }
  0x36   : > { %s2373_s15 = smov [#allocation14]  }
  0x37   : > { %s455_s24 = sshll.u32 %s2373_s15, 4  ;;  %s456_s24 = int_to_ptr.vmem [resolvable:$true] %s455_s24 }
  0x38   : > { %s2156_s21 = scalar_lea.vmem %s456_s24, 16  ;;  %s2163_s25 = scalar_lea.vmem %s456_s24, 32 }
  0x39   : > { %p2157_p3 = scmp.ne.s32.totalorder %s456_s24, %s2156_s21  ;;  %p2164_p4 = scmp.lt.s32.totalorder %s456_s24, %s456_s24 }
  0x3a   : > { %p2165_p10 = scmp.lt.s32.totalorder %s2163_s25, %s2156_s21 }
  0x3b   : > { %p2159_p8 = pnand %p2157_p3, %p2534_p0 }
  0x3c   : > { %p2166_p11 = por %p2165_p10, %p2164_p4 }
  0x3d   : > { %p2160_p5 = pneg %p2159_p8 }
  0x3f   : > { %p2167_p6 = pnand %p2166_p11, %p2160_p5 }
  0x41   : > { %2170 = shalt.err (!%p2167_p6)
}
  0x42   : > { %1975 = dma.hbm_to_vmem [thread:$0]  (!%p2528_p13), %s2839_s8, 16, %s456_s24, [#allocation15]  }
  0x43   : > { %s2374_s29 = smov [#allocation5]   ;;  %s2375_s18 = smov [#allocation10]  }
  0x44   : > { %s395_s17 = sshll.u32 %s2374_s29, 4  ;;  %s420_s26 = sshll.u32 %s2375_s18, 4  ;;  %s396_s17 = int_to_ptr.vmem [resolvable:$true] %s395_s17  ;;  %s421_s26 = int_to_ptr.vmem [resolvable:$true] %s420_s26 }
  0x45   : > { %s2182_s20 = scalar_lea.vmem %s396_s17, 16  ;;  %s2189_s15 = scalar_lea.vmem %s396_s17, 32 }
  0x46   : > { %p2183_p7 = scmp.ne.s32.totalorder %s396_s17, %s2182_s20  ;;  %p2190_p1 = scmp.lt.s32.totalorder %s396_s17, %s396_s17 }
  0x47   : > { %p2191_p2 = scmp.lt.s32.totalorder %s2189_s15, %s2182_s20 }
  0x48   : > { %p2185_p9 = pnand %p2183_p7, %p2534_p0 }
  0x49   : > { %p2192_p3 = por %p2191_p2, %p2190_p1 }
  0x4a   : > { %p2186_p12 = pneg %p2185_p9 }
  0x4c   : > { %p2193_p8 = pnand %p2192_p3, %p2186_p12 }
  0x4e   : > { %2196 = shalt.err (!%p2193_p8)
}
  0x4f   : > { %1960 = dma.hbm_to_vmem [thread:$0]  (!%p2528_p13), %s2833_s2, 16, %s396_s17, [#allocation6]  }
  0x50   : > { %s2208_s24 = scalar_lea.vmem %s421_s26, 16  ;;  %s2215_s21 = scalar_lea.vmem %s421_s26, 32 }
  0x51   : > { %p2209_p5 = scmp.ne.s32.totalorder %s421_s26, %s2208_s24  ;;  %p2216_p11 = scmp.lt.s32.totalorder %s421_s26, %s421_s26 }
  0x52   : > { %p2217_p6 = scmp.lt.s32.totalorder %s2215_s21, %s2208_s24 }
  0x53   : > { %p2211_p4 = pnand %p2209_p5, %p2534_p0 }
  0x54   : > { %p2218_p7 = por %p2217_p6, %p2216_p11 }
  0x55   : > { %p2212_p10 = pneg %p2211_p4 }
  0x57   : > { %p2219_p9 = pnand %p2218_p7, %p2212_p10 }
  0x59   : > { %2222 = shalt.err (!%p2219_p9)
}
  0x5a   : > { %1966 = dma.hbm_to_vmem [thread:$0]  (!%p2528_p13), %s2836_s5, 16, %s421_s26, [#allocation9]  }
  0x5b   : > { %s2376_s18 = smov [#allocation13]   ;;  %s2377_s20 = smov [#allocation16]  }
  0x5c   : > { %s444_s17 = sshll.u32 %s2376_s18, 4  ;;  %s466_s15 = sshll.u32 %s2377_s20, 4  ;;  %s445_s17 = int_to_ptr.vmem [resolvable:$true] %s444_s17  ;;  %s467_s15 = int_to_ptr.vmem [resolvable:$true] %s466_s15 }
  0x5d   : > { %s2234_s3 = scalar_lea.vmem %s445_s17, 16  ;;  %s2241_s14 = scalar_lea.vmem %s445_s17, 32 }
  0x5e   : > { %p2235_p12 = scmp.ne.s32.totalorder %s445_s17, %s2234_s3  ;;  %p2242_p3 = scmp.lt.s32.totalorder %s445_s17, %s445_s17 }
  0x5f   : > { %p2243_p8 = scmp.lt.s32.totalorder %s2241_s14, %s2234_s3 }
  0x60   : > { %p2237_p1 = pnand %p2235_p12, %p2534_p0 }
  0x61   : > { %p2244_p5 = por %p2243_p8, %p2242_p3 }
  0x62   : > { %p2238_p2 = pneg %p2237_p1 }
  0x64   : > { %p2245_p4 = pnand %p2244_p5, %p2238_p2 }
  0x66   : > { %2248 = shalt.err (!%p2245_p4)
}
  0x67   : > { %1972 = dma.hbm_to_vmem [thread:$0]  (!%p2528_p13), %s2838_s7, 16, %s445_s17, [#allocation12]  }
  0x68   : > { %s2260_s21 = scalar_lea.vmem %s467_s15, 16  ;;  %s2267_s25 = scalar_lea.vmem %s467_s15, 32 }
  0x69   : > { %p2261_p10 = scmp.ne.s32.totalorder %s467_s15, %s2260_s21  ;;  %p2268_p7 = scmp.lt.s32.totalorder %s467_s15, %s467_s15 }
  0x6a   : > { %p2269_p9 = scmp.lt.s32.totalorder %s2267_s25, %s2260_s21 }
  0x6b   : > { %p2263_p11 = pnand %p2261_p10, %p2534_p0 }
  0x6c   : > { %p2270_p12 = por %p2269_p9, %p2268_p7 }
  0x6d   : > { %p2264_p6 = pneg %p2263_p11 }
  0x6f   : > { %p2271_p1 = pnand %p2270_p12, %p2264_p6 }
  0x71   : > { %2274 = shalt.err (!%p2271_p1)
}
  0x72   : > { %1978 = dma.hbm_to_vmem [thread:$0]  (!%p2528_p13), %s2840_s9, 16, %s467_s15, [#allocation15]  }
  0x73   : > { %p2874_p2 = scmp.ne.s32.totalorder %s2869_s27, 0 }
  0x74   : > { %p2875_p3 = scmp.ne.s32.totalorder (!%p2874_p2), %s2870_s28, 0 }
  0x75   : > { %508 = sbr.rel (%p2874_p2) target bundleno = 3743 (0xe9f), region = 76 }
  0x7a   : > { %2326 = dma.done.wait (%p2875_p3), [#allocation6], 16  }
  0x7b   : > { %2328 = vsyncadd (%p2875_p3), [#allocation6], 4294967280 }
  0x7c   : > { %2330 = dma.done.wait (%p2875_p3), [#allocation9], 32  }
  0x7d   : > { %2332 = vsyncadd (%p2875_p3), [#allocation9], 4294967264 }
  0x7e   : > { %2334 = dma.done.wait (%p2875_p3), [#allocation12], 272  }
  0x7f   : > { %2336 = vsyncadd (%p2875_p3), [#allocation12], 4294967024 }
  0x80   : > { %2338 = dma.done.wait (%p2875_p3), [#allocation15], 32  }
  0x81   : > { %2340 = vsyncadd (%p2875_p3), [#allocation15], 4294967264  ;;  %p584_p13 = scmp.lt.s32.totalorder %s2359_s16, 1  ;;  %vm603_vm0 = vcmask 261120   ;;  %v2062_v7 = vld [vmem:[%s2835_s4 + $0x8] sm:$0xff]   ;;  %v2378_v8 = vmov 0.0  }
  0x82   : > { %1827 = vmatprep.subr.bf16.mxu1 %v2378_v8  ;;  %vm2379_vm1 = vmmov 0   ;;  %v2063_v9 = vld [vmem:[%s2835_s4] sm:$0xff]   ;;  %1841 = vmatprep.subr.bf16.mxu0 %v2378_v8  ;;  %v1752_v14 = vld [vmem:[#allocation5] ss:$0 sm:$0xff]  ;;  %v1753_v16 = vld [vmem:[#allocation8] ss:$0 sm:$0xff] }
  0x83   : > { %s2607_s27 = scalar_select %p584_p13, %s2359_s16, 1  ;;  %1831 = vmatprep.mubr.msk.bf16.mxu1 %vm2379_vm1, %v2378_v8  ;;  %1828 = vmatpush3.bf16.msra.mxu1 %v2062_v7  ;;  %v1754_v20 = vld [vmem:[#allocation10] ss:$0 sm:$0xff]  ;;  %vm701_vm2 = vcmask 257024   ;;  %vm726_vm3 = vcmask 64512   ;;  %vm788_vm4 = vcmask 1043456  }
  0x84   : > { %1829 = vmatprep.subr.bf16.mxu1 %v2378_v8  ;;  %1843 = vmatprep.mubr.msk.bf16.mxu0 %vm2379_vm1, %v2378_v8  ;;  %s2380_s26 = smov 96   ;;  %s2381_s24 = smov 120   ;;  %vm1513_vm5 = vcmask 523264  }
  0x85   : > { %s1750_s22 = sshll.u32 %s2607_s27, 3  ;;  %s2382_s18 = smov 64  }
  0x86   : > { %s587_s20 = scalar_lea.vmem %s2831_s0, %s1750_s22  ;;  %s594_s29 = scalar_lea.vmem %s2832_s1, %s1750_s22 }
  0x87   : > { %v2615_v0 = vld [vmem:[%s587_s20] sm:$0xff]  ;;  %1830 = vmatpush3.bf16.msra.mxu1 %v2063_v9  ;;  %s2383_s27 = smov 112   ;;  %v954_v9 = vld [vmem:[#allocation11 + $0x4] sm:$0xf]  ;;  %s2384_s22 = smov 104  }
  0x88   : > { %v604_v1 = vsel %vm603_vm0, %v2615_v0, 0.0  ;;  %1835 = vmatprep.subr.bf16.mxu1 %v2378_v8  ;;  %v2663_v38 = vld [vmem:[%s594_s29] sm:$0xff]  ;;  %s1788_s28 = sshll.u32 %s2359_s16, 7  ;;  %p2877_p8 = scmp.ne.s32.totalorder %s2865_s23, 0 }
  0x89   : > { %605 = vadd.xlane.f32.xlu0 %v604_v1  ;;  %s2385_s29 = smov [#allocation17]  }
 0x112   : > { %v606_v2 = vpop.xlane.xlu0 %605 }
 0x113   : > { %v608_v3 = vmul.f32 0.03125, %v606_v2 }
 0x115   : > { %v609_v4 = vsub.f32 %v2615_v0, %v608_v3 }
 0x117   : > { %v610_v5 = vmul.f32 %v609_v4, %v609_v4 }
 0x119   : > { %v611_v6 = vsel %vm603_vm0, %v610_v5, 0.0 }
 0x11a   : > { %612 = vadd.xlane.f32.xlu0 %v611_v6 }
 0x1a3   : > { %v613_v10 = vpop.xlane.xlu0 %612 }
 0x1a4   : > { %v614_v11 = vmul.f32 0.03125, %v613_v10  ;;  %v959_v10 = vsel %vm788_vm4, %v954_v9, 0 }
 0x1a6   : > { %v615_v12 = vadd.f32 1e-05, %v614_v11 }
 0x1a8   : > { %2073 = vrsqrt.f32 %v615_v12 }
 0x1b5   : > { %v2074_v13 = vpop.eup %2073 }
 0x1b6   : > { %v617_v15 = vmul.f32 %v2074_v13, %v609_v4  ;;  %v833_v13 = vld [vmem:[#allocation11] sm:$0xf] }
 0x1b8   : > { %v624_v17 = vmul.f32 %v1752_v14, %v617_v15 }
 0x1ba   : > { %v631_v18 = vadd.f32 %v1753_v16, %v624_v17  ;;  %v1005_v16 = vsel %vm788_vm4, %v833_v13, 0 }
 0x1bc   : > { %v632_v19 = vpack.c.bf16 %v631_v18, %v631_v18 }
 0x1be   : > { %1832 = vmatmul.mubr.msk.bf16.vlgmr.msra.gmra.mxu1 %vm603_vm0, %v632_v19 }
 0x1bf   : > { %1837 = vmatprep.mubr.msk.bf16.mxu1 %vm2379_vm1, %v2378_v8 }
 0x27e   : > { %v693_v21 = vpop.f32.mrf.mxu1 }
 0x27f   : > { %v694_v22 = vadd.f32 %v1754_v20, %v693_v21 }
 0x280   : > { %v1833_v23 = vpop.f32.mrf.mxu1 }
 0x281   : > { %v699_v24 = vmul.f32 0.35355338, %v694_v22  ;;  %v1791_v25 = vpack.c.bf16 %v694_v22, %v694_v22 }
 0x282   : > { %v696_v26 = vpop.f32.mrf.mxu1 }
 0x283   : > { %v700_v27 = vpack.c.bf16 %v699_v24, %v699_v24  ;;  %707 = vrot.lane.b32.xlu1 %v1791_v25, %s2380_s26 }
 0x284   : > { %v1834_v28 = vpop.f32.mrf.mxu1 }
 0x285   : > { %702 = vst.msk [vmem:[#allocation2] sm:$0xf] %vm701_vm2, %v700_v27 }
 0x28c   : > { %v722_v29 = vld [vmem:[#allocation2] sm:$0xf] }
 0x28d   : > { %v2639_v30 = vcombine.low %v722_v29, %v722_v29 }
 0x28f   : > { %837 = vrot.lane.b32.xlu0 %v2639_v30, %s2381_s24 }
 0x2f5   : > { %v708_v31 = vpop.permute.xlu1 %707 }
 0x2f6   : > { %710 = vst.msk [vmem:[#allocation3] sm:$0xf] %vm701_vm2, %v708_v31 }
 0x2fd   : > { %v724_v32 = vld [vmem:[#allocation3] sm:$0xf] }
 0x2fe   : > { %v731_v33 = vsel %vm726_vm3, %v724_v32, 0  ;;  %v2645_v34 = vcombine.low %v724_v32, %v724_v32 }
 0x2ff   : > { %1836 = vmatpush3.bf16.xpose.msra.mxu1 %v731_v33 }
 0x300   : > { %842 = vrot.lane.b32.xlu1 %v2645_v34, %s2381_s24  ;;  %1847 = vmatprep.subr.bf16.mxu1 %v2378_v8 }
 0x301   : > { %v838_v37 = vpop.permute.xlu0 %837 }
 0x306   : > { %1838 = vmatmul.mubr.msk.bf16.vlgmr.msra.gmra.mxu1 %vm726_vm3, %v722_v29 }
 0x307   : > { %1849 = vmatprep.mubr.msk.bf16.mxu1 %vm2379_vm1, %v2378_v8 }
 0x372   : > { %v843_v35 = vpop.permute.xlu1 %842 }
 0x373   : > { %v848_v36 = vsel %vm726_vm3, %v843_v35, 0 }
 0x374   : > { %1848 = vmatpush3.bf16.xpose.msra.mxu1 %v848_v36 }
 0x375   : > { %1859 = vmatprep.subr.bf16.mxu1 %v2378_v8 }
 0x37b   : > { %1850 = vmatmul.mubr.msk.bf16.vlgmr.msra.gmra.mxu1 %vm726_vm3, %v838_v37 }
 0x37c   : > { %1861 = vmatprep.mubr.msk.bf16.mxu1 %vm2379_vm1, %v2378_v8  ;;  %1860 = vmatpush3.bf16.msra.mxu1 %v959_v10 }
 0x37d   : > { %1871 = vmatprep.subr.bf16.mxu1 %v2378_v8 }
 0x3c6   : > { %v767_v39 = vpop.f32.mrf.mxu1 }
 0x3c7   : > { %v768_v40 = vadd.f32 %v767_v39, %v2663_v38 }
 0x3c8   : > { %v1839_v41 = vpop.f32.mrf.mxu1 }
 0x3c9   : > { %v773_v42 = vsel %vm726_vm3, %v768_v40, -inf }
 0x3ca   : > { %774 = vmax.xlane.f32.xlu1 %v773_v42  ;;  %v770_v43 = vpop.f32.mrf.mxu1 }
 0x3cc   : > { %v1840_v44 = vpop.f32.mrf.mxu1 }
 0x3db   : > { %711 = vrot.lane.b32.xlu1 %v1791_v25, %s2382_s18  ;;  %s2279_s18 = sshll.u32 %s2385_s29, 4  ;;  %s2280_s18 = int_to_ptr.vmem [resolvable:$false] %s2279_s18 }
 0x43b   : > { %v884_v45 = vpop.f32.mrf.mxu1 }
 0x43c   : > { %v885_v46 = vadd.f32 %v884_v45, %v2663_v38 }
 0x43d   : > { %v1851_v47 = vpop.f32.mrf.mxu1 }
 0x43e   : > { %v890_v48 = vsel %vm726_vm3, %v885_v46, -inf }
 0x43f   : > { %891 = vmax.xlane.f32.xlu0 %v890_v48  ;;  %v887_v49 = vpop.f32.mrf.mxu1 }
 0x441   : > { %v1852_v50 = vpop.f32.mrf.mxu1 }
 0x453   : > { %v775_v51 = vpop.xlane.xlu1 %774 }
 0x454   : > { %v776_v52 = vsub.f32 %v768_v40, %v775_v51 }
 0x456   : > { %v777_v53 = vmul.f32 1.442695, %v776_v52 }
 0x457   : > { %v712_v54 = vpop.permute.xlu1 %711 }
 0x458   : > { %2075 = vpow2.f32 %v777_v53  ;;  %714 = vst.msk [vmem:[#allocation4] sm:$0xf] %vm701_vm2, %v712_v54 }
 0x45f   : > { %v725_v55 = vld [vmem:[#allocation4] sm:$0xf] }
 0x460   : > { %v790_v56 = vsel %vm788_vm4, %v725_v55, 0  ;;  %v2673_v59 = vcombine.low %v725_v55, %v725_v55 }
 0x461   : > { %1842 = vmatpush3.bf16.msra.mxu0 %v790_v56 }
 0x462   : > { %1853 = vmatprep.subr.bf16.mxu0 %v2378_v8 }
 0x465   : > { %v2076_v57 = vpop.eup %2075 }
 0x466   : > { %v779_v58 = vsel %vm726_vm3, %v2076_v57, 0.0 }
 0x467   : > { %780 = vadd.xlane.f32.xlu0 %v779_v58 }
 0x47d   : > { %905 = vrot.lane.b32.xlu0 %v2673_v59, %s2381_s24  ;;  %s2876_s24 = sld [smem:[#allocation31_spill]] }
 0x481   : > { %1049 = vrot.lane.b32.xlu0 %v2645_v34, %s2383_s27 }
 0x483   : > { %s2784_s21 = scalar_lea.hbm %s2876_s24, %s1788_s28 }
 0x485   : > { %1047 = vrot.lane.b32.xlu0 %v2639_v30, %s2383_s27 }
 0x4c8   : > { %v892_v60 = vpop.xlane.xlu0 %891 }
 0x4c9   : > { %v893_v61 = vsub.f32 %v885_v46, %v892_v60 }
 0x4cb   : > { %v894_v62 = vmul.f32 1.442695, %v893_v61 }
 0x4cd   : > { %2077 = vpow2.f32 %v894_v62 }
 0x4da   : > { %v2078_v63 = vpop.eup %2077 }
 0x4db   : > { %v896_v1 = vsel %vm726_vm3, %v2078_v63, 0.0 }
 0x4dc   : > { %897 = vadd.xlane.f32.xlu1 %v896_v1 }
 0x4ed   : > { %1109 = vrot.lane.b32.xlu1 %v2673_v59, %s2383_s27  ;;  %s2281_s27 = scalar_lea.vmem %s2280_s18, 256 }
 0x4f0   : > { %v781_v2 = vpop.xlane.xlu0 %780 }
 0x4f1   : > { %2079 = vrcp.f32 %v781_v2 }
 0x4f4   : > { %v906_v5 = vpop.permute.xlu0 %905 }
 0x4f5   : > { %v911_v7 = vsel %vm788_vm4, %v906_v5, 0 }
 0x4f8   : > { %v1050_v24 = vpop.permute.xlu0 %1049 }
 0x4f9   : > { %v1055_v28 = vsel %vm726_vm3, %v1050_v24, 0 }
 0x4fc   : > { %v1048_v32 = vpop.permute.xlu0 %1047 }
 0x4fe   : > { %v2080_v3 = vpop.eup %2079 }
 0x4ff   : > { %v783_v4 = vmul.f32 %v2080_v3, %v2076_v57 }
 0x501   : > { %v784_v6 = vpack.c.bf16 %v783_v4, %v783_v4 }
 0x503   : > { %1844 = vmatmul.mubr.msk.bf16.vlgmr.msra.gmra.mxu0 %vm726_vm3, %v784_v6 }
 0x504   : > { %1854 = vmatpush3.bf16.msra.mxu0 %v911_v7  ;;  %1855 = vmatprep.mubr.msk.bf16.mxu0 %vm2379_vm1, %v2378_v8 }
 0x505   : > { %1865 = vmatprep.subr.bf16.mxu0 %v2378_v8 }
 0x565   : > { %v898_v11 = vpop.xlane.xlu1 %897 }
 0x566   : > { %2081 = vrcp.f32 %v898_v11 }
 0x569   : > { %v1110_v17 = vpop.permute.xlu1 %1109 }
 0x56a   : > { %v1115_v21 = vsel %vm788_vm4, %v1110_v17, 0 }
 0x573   : > { %v2082_v12 = vpop.eup %2081 }
 0x574   : > { %v900_v14 = vmul.f32 %v2082_v12, %v2078_v63 }
 0x576   : > { %v901_v15 = vpack.c.bf16 %v900_v14, %v900_v14 }
 0x578   : > { %1856 = vmatmul.mubr.msk.bf16.vlgmr.msra.gmra.mxu0 %vm726_vm3, %v901_v15 }
 0x579   : > { %1866 = vmatpush3.bf16.msra.mxu0 %v1005_v16  ;;  %1867 = vmatprep.mubr.msk.bf16.mxu0 %vm2379_vm1, %v2378_v8 }
 0x57a   : > { %1877 = vmatprep.subr.bf16.mxu0 %v2378_v8 }
 0x5c3   : > { %v826_v18 = vpop.f32.mrf.mxu0 }
 0x5c4   : > { %v832_v19 = vpack.c.bf16 %v826_v18, %v826_v18 }
 0x5c5   : > { %v1845_v20 = vpop.f32.mrf.mxu0 }
 0x5c6   : > { %1868 = vmatmul.mubr.msk.bf16.vlgmr.msra.gmra.mxu0 %vm726_vm3, %v832_v19  ;;  %v1317_v20 = vld [vmem:[#allocation11 + $0xc] sm:$0xf] }
 0x5c7   : > { %1878 = vmatpush3.bf16.msra.mxu0 %v1115_v21  ;;  %v829_v22 = vpop.f32.mrf.mxu0  ;;  %1879 = vmatprep.mubr.msk.bf16.mxu0 %vm2379_vm1, %v2378_v8  ;;  %v1322_v21 = vsel %vm788_vm4, %v1317_v20, 0 }
 0x5c8   : > { %1889 = vmatprep.subr.bf16.mxu0 %v2378_v8 }
 0x5c9   : > { %v1846_v23 = vpop.f32.mrf.mxu0 }
 0x638   : > { %v947_v25 = vpop.f32.mrf.mxu0 }
 0x639   : > { %v953_v26 = vpack.c.bf16 %v947_v25, %v947_v25 }
 0x63a   : > { %v1857_v27 = vpop.f32.mrf.mxu0 }
 0x63b   : > { %1862 = vmatmul.mubr.msk.bf16.vlgmr.msra.gmra.mxu1 %vm726_vm3, %v953_v26 }
 0x63c   : > { %1872 = vmatpush3.bf16.xpose.msra.mxu1 %v1055_v28  ;;  %v950_v29 = vpop.f32.mrf.mxu0  ;;  %1873 = vmatprep.mubr.msk.bf16.mxu1 %vm2379_vm1, %v2378_v8 }
 0x63d   : > { %1883 = vmatprep.subr.bf16.mxu1 %v2378_v8 }
 0x63e   : > { %v1858_v31 = vpop.f32.mrf.mxu0 }
 0x643   : > { %1874 = vmatmul.mubr.msk.bf16.vlgmr.msra.gmra.mxu1 %vm726_vm3, %v1048_v32 }
 0x644   : > { %1885 = vmatprep.mubr.msk.bf16.mxu1 %vm2379_vm1, %v2378_v8 }
 0x686   : > { %v2706_v33 = vpop.f32.mrf.mxu0 }
 0x688   : > { %v1869_v35 = vpop.f32.mrf.mxu0 }
 0x68a   : > { %v1044_v36 = vpop.f32.mrf.mxu0 }
 0x68b   : > { %v1774_v36 = vld [vmem:[#allocation13] ss:$0 sm:$0xff] }
 0x68c   : > { %v1870_v37 = vpop.f32.mrf.mxu0 }
 0x6fb   : > { %v2708_v39 = vpop.f32.mrf.mxu1 }
 0x6fc   : > { %v1042_v17 = vadd.f32 %v2706_v33, %v2708_v39 }
 0x6fd   : > { %v1863_v40 = vpop.f32.mrf.mxu1 }
 0x6ff   : > { %v998_v41 = vpop.f32.mrf.mxu1 }
 0x701   : > { %v1864_v42 = vpop.f32.mrf.mxu1 }
 0x703   : > { %v1091_v43 = vpop.f32.mrf.mxu1 }
 0x704   : > { %v1092_v44 = vadd.f32 %v1091_v43, %v2663_v38 }
 0x705   : > { %v1875_v45 = vpop.f32.mrf.mxu1 }
 0x706   : > { %v1097_v46 = vsel %vm726_vm3, %v1092_v44, -inf }
 0x707   : > { %1098 = vmax.xlane.f32.xlu0 %v1097_v46  ;;  %v1094_v47 = vpop.f32.mrf.mxu1 }
 0x709   : > { %v1876_v48 = vpop.f32.mrf.mxu1 }
 0x790   : > { %v1099_v49 = vpop.xlane.xlu0 %1098 }
 0x791   : > { %v1100_v50 = vsub.f32 %v1092_v44, %v1099_v49 }
 0x793   : > { %v1101_v51 = vmul.f32 1.442695, %v1100_v50  ;;  %v2067_v50 = vld [vmem:[%s2841_s10 + $0x8] sm:$0xff]  }
 0x795   : > { %2083 = vpow2.f32 %v1101_v51  ;;  %v2069_v51 = vld [vmem:[%s2843_s12 + $0x18] sm:$0xff]  }
 0x7a2   : > { %v2084_v52 = vpop.eup %2083 }
 0x7a3   : > { %v1103_v53 = vsel %vm726_vm3, %v2084_v52, 0.0 }
 0x7a4   : > { %1104 = vadd.xlane.f32.xlu1 %v1103_v53 }
 0x7b5   : > { %1208 = vrot.lane.b32.xlu1 %v2645_v34, %s2384_s22 }
 0x7b9   : > { %1206 = vrot.lane.b32.xlu1 %v2639_v30, %s2384_s22  ;;  %v1158_v30 = vld [vmem:[#allocation11 + $0x8] sm:$0xf] }
 0x7ba   : > { %v1163_v61 = vsel %vm788_vm4, %v1158_v30, 0 }
 0x7bb   : > { %1884 = vmatpush3.bf16.msra.mxu1 %v1163_v61 }
 0x7bc   : > { %1895 = vmatprep.subr.bf16.mxu1 %v2378_v8 }
 0x82d   : > { %v1105_v54 = vpop.xlane.xlu1 %1104 }
 0x82e   : > { %2085 = vrcp.f32 %v1105_v54 }
 0x831   : > { %v1209_v57 = vpop.permute.xlu1 %1208 }
 0x832   : > { %v1214_v60 = vsel %vm726_vm3, %v1209_v57, 0  ;;  %v1775_v57 = vld [vmem:[#allocation14] ss:$0 sm:$0xff] }
 0x835   : > { %v1207_v34 = vpop.permute.xlu1 %1206 }
 0x83b   : > { %v2086_v55 = vpop.eup %2085 }
 0x83c   : > { %v1107_v56 = vmul.f32 %v2086_v55, %v2084_v52  ;;  %v2070_v52 = vld [vmem:[%s2843_s12 + $0x10] sm:$0xff]  }
 0x83e   : > { %v1108_v58 = vpack.c.bf16 %v1107_v56, %v1107_v56 }
 0x840   : > { %1880 = vmatmul.mubr.msk.bf16.vlgmr.msra.gmra.mxu0 %vm726_vm3, %v1108_v58 }
 0x841   : > { %1890 = vmatpush3.bf16.xpose.msra.mxu0 %v1214_v60  ;;  %1891 = vmatprep.mubr.msk.bf16.mxu0 %vm2379_vm1, %v2378_v8  ;;  %v1776_v60 = vld [vmem:[#allocation16] ss:$0 sm:$0xff] }
 0x842   : > { %1901 = vmatprep.subr.bf16.mxu0 %v2378_v8 }
 0x848   : > { %1892 = vmatmul.mubr.msk.bf16.vlgmr.msra.gmra.mxu0 %vm726_vm3, %v1207_v34 }
 0x849   : > { %1903 = vmatprep.mubr.msk.bf16.mxu0 %vm2379_vm1, %v2378_v8  ;;  %1902 = vmatpush3.bf16.msra.mxu0 %v1322_v21 }
 0x84a   : > { %1915 = vmatprep.subr.bf16.mxu0 %v2378_v8 }
 0x900   : > { %v1151_v62 = vpop.f32.mrf.mxu0 }
 0x901   : > { %v1157_v63 = vpack.c.bf16 %v1151_v62, %v1151_v62  ;;  %v2071_v62 = vld [vmem:[%s2843_s12 + $0x8] sm:$0xff]  }
 0x902   : > { %v1881_v1 = vpop.f32.mrf.mxu0 }
 0x903   : > { %1886 = vmatmul.mubr.msk.bf16.vlgmr.msra.gmra.mxu1 %vm726_vm3, %v1157_v63  ;;  %v2072_v63 = vld [vmem:[%s2843_s12] sm:$0xff]  }
 0x904   : > { %v1154_v2 = vpop.f32.mrf.mxu0  ;;  %1897 = vmatprep.mubr.msk.bf16.mxu1 %vm2379_vm1, %v2378_v8  ;;  %v1777_v1 = vld [vmem:[%s2842_s11] ss:$0 sm:$0xff] }
 0x906   : > { %v1882_v3 = vpop.f32.mrf.mxu0 }
 0x908   : > { %v1250_v4 = vpop.f32.mrf.mxu0 }
 0x909   : > { %v1251_v5 = vadd.f32 %v1250_v4, %v2663_v38 }
 0x90a   : > { %v1893_v6 = vpop.f32.mrf.mxu0 }
 0x90b   : > { %v1256_v7 = vsel %vm726_vm3, %v1251_v5, -inf }
 0x90c   : > { %1257 = vmax.xlane.f32.xlu0 %v1256_v7  ;;  %v1253_v9 = vpop.f32.mrf.mxu0 }
 0x90e   : > { %v1894_v10 = vpop.f32.mrf.mxu0 }
 0x922   : > { %1268 = vrot.lane.b32.xlu0 %v2673_v59, %s2384_s22  ;;  %s581_s22 = sand.u32 1, %s2351_s30  }
 0x923   : > { %s1749_s19 = sshll.u32 %s581_s22, 3  ;;  %s1560_s16 = scalar_lea.sflag [#allocation7], %s581_s22 }
 0x924   : > { %s583_s15 = scalar_lea.vmem [#allocation17], %s1749_s19 }
 0x925   : > { %s1574_s3 = sshll.u32 %s583_s15, 4  ;;  %s2786_s3 = int_to_ptr.vmem [resolvable:$true] %s1574_s3 }
 0x926   : > { %s2275_s25 = scalar_lea.vmem %s2786_s3, 128  ;;  %p2282_p10 = scmp.lt.s32.totalorder %s2786_s3, %s2280_s18 }
 0x927   : > { %p2276_p0 = scmp.ne.s32.totalorder %s2786_s3, %s2275_s25  ;;  %p2283_p11 = scmp.lt.s32.totalorder %s2281_s27, %s2275_s25 }
 0x929   : > { %p2277_p5 = pnand %p2276_p0, %p2877_p8  ;;  %p2284_p6 = por %p2283_p11, %p2282_p10 }
 0x92b   : > { %p2278_p4 = pneg %p2277_p5 }
 0x92d   : > { %p2285_p7 = pnand %p2284_p6, %p2278_p4 }
 0x995   : > { %v1258_v11 = vpop.xlane.xlu0 %1257 }
 0x996   : > { %v1259_v12 = vsub.f32 %v1251_v5, %v1258_v11 }
 0x998   : > { %v1260_v13 = vmul.f32 1.442695, %v1259_v12 }
 0x999   : > { %v1269_v14 = vpop.permute.xlu0 %1268 }
 0x99a   : > { %2087 = vpow2.f32 %v1260_v13  ;;  %v1274_v15 = vsel %vm788_vm4, %v1269_v14, 0 }
 0x99b   : > { %1896 = vmatpush3.bf16.msra.mxu1 %v1274_v15 }
 0x99c   : > { %1907 = vmatprep.subr.bf16.mxu1 %v2378_v8 }
 0x9a7   : > { %v2088_v38 = vpop.eup %2087 }
 0x9a8   : > { %v1262_v16 = vsel %vm726_vm3, %v2088_v38, 0.0 }
 0x9a9   : > { %1263 = vadd.xlane.f32.xlu1 %v1262_v16 }
 0x9c3   : > { %v1199_v18 = vpop.f32.mrf.mxu1 }
 0x9c4   : > { %v1205_v19 = vadd.f32 %v1199_v18, %v1042_v17 }
 0x9c5   : > { %v1887_v59 = vpop.f32.mrf.mxu1 }
 0x9c7   : > { %v1202_v22 = vpop.f32.mrf.mxu1 }
 0x9c9   : > { %v1888_v23 = vpop.f32.mrf.mxu1 }
 0xa32   : > { %v1264_v24 = vpop.xlane.xlu1 %1263 }
 0xa33   : > { %2089 = vrcp.f32 %v1264_v24 }
 0xa40   : > { %v2090_v25 = vpop.eup %2089 }
 0xa41   : > { %v1266_v26 = vmul.f32 %v2090_v25, %v2088_v38 }
 0xa43   : > { %v1267_v27 = vpack.c.bf16 %v1266_v26, %v1266_v26 }
 0xa45   : > { %1898 = vmatmul.mubr.msk.bf16.vlgmr.msra.gmra.mxu1 %vm726_vm3, %v1267_v27 }
 0xa46   : > { %1911 = vmatprep.mubr.msk.bf16.mxu1 %vm2379_vm1, %v2378_v8  ;;  %1908 = vmatpush3.bf16.msra.mxu1 %v2067_v50 }
 0xa47   : > { %1909 = vmatprep.subr.bf16.mxu1 %v2378_v8 }
 0xb05   : > { %v1310_v28 = vpop.f32.mrf.mxu1 }
 0xb06   : > { %v1316_v29 = vpack.c.bf16 %v1310_v28, %v1310_v28 }
 0xb07   : > { %v1899_v31 = vpop.f32.mrf.mxu1 }
 0xb08   : > { %1904 = vmatmul.mubr.msk.bf16.vlgmr.msra.gmra.mxu0 %vm726_vm3, %v1316_v29 }
 0xb09   : > { %v1313_v32 = vpop.f32.mrf.mxu1  ;;  %1923 = vmatprep.mubr.msk.bf16.mxu0 %vm2379_vm1, %v2378_v8  ;;  %1916 = vmatpush3.bf16.msra.mxu0 %v2069_v51 }
 0xb0a   : > { %1917 = vmatprep.subr.bf16.mxu0 %v2378_v8 }
 0xb0b   : > { %v1900_v33 = vpop.f32.mrf.mxu1 }
 0xb0d   : > { %1918 = vmatpush3.bf16.msra.mxu0 %v2070_v52 }
 0xb0e   : > { %1919 = vmatprep.subr.bf16.mxu0 %v2378_v8 }
 0xb11   : > { %1920 = vmatpush3.bf16.msra.mxu0 %v2071_v62 }
 0xb12   : > { %1921 = vmatprep.subr.bf16.mxu0 %v2378_v8  ;;  %v1781_v8 = vld [vmem:[%s2844_s13] ss:$0 sm:$0xff] }
 0xb15   : > { %1922 = vmatpush3.bf16.msra.mxu0 %v2072_v63 }
 0xbc8   : > { %v1358_v35 = vpop.f32.mrf.mxu0 }
 0xbc9   : > { %v1364_v37 = vadd.f32 %v1358_v35, %v1205_v19 }
 0xbca   : > { %v1905_v39 = vpop.f32.mrf.mxu0 }
 0xbcb   : > { %v1372_v40 = vadd.f32 %v1774_v36, %v1364_v37 }
 0xbcc   : > { %v1361_v41 = vpop.f32.mrf.mxu0 }
 0xbcd   : > { %v1373_v42 = vadd.f32 %v1372_v40, %v2615_v0  ;;  %v2068_v0 = vld [vmem:[%s2841_s10] sm:$0xff]  }
 0xbce   : > { %v1906_v43 = vpop.f32.mrf.mxu0  ;;  %1910 = vmatpush3.bf16.msra.mxu1 %v2068_v0 }
 0xbcf   : > { %v1377_v44 = vsel %vm603_vm0, %v1373_v42, 0.0 }
 0xbd0   : > { %1378 = vadd.xlane.f32.xlu0 %v1377_v44 }
 0xc59   : > { %v1379_v45 = vpop.xlane.xlu0 %1378 }
 0xc5a   : > { %v1381_v46 = vmul.f32 0.03125, %v1379_v45 }
 0xc5c   : > { %v1382_v47 = vsub.f32 %v1373_v42, %v1381_v46 }
 0xc5e   : > { %v1383_v48 = vmul.f32 %v1382_v47, %v1382_v47 }
 0xc60   : > { %v1384_v49 = vsel %vm603_vm0, %v1383_v48, 0.0 }
 0xc61   : > { %1385 = vadd.xlane.f32.xlu1 %v1384_v49 }
 0xcea   : > { %v1386_v53 = vpop.xlane.xlu1 %1385 }
 0xceb   : > { %v1387_v54 = vmul.f32 0.03125, %v1386_v53 }
 0xced   : > { %v1388_v55 = vadd.f32 1e-05, %v1387_v54 }
 0xcef   : > { %2091 = vrsqrt.f32 %v1388_v55 }
 0xcfc   : > { %v2092_v56 = vpop.eup %2091 }
 0xcfd   : > { %v1390_v58 = vmul.f32 %v2092_v56, %v1382_v47 }
 0xcff   : > { %v1397_v34 = vmul.f32 %v1775_v57, %v1390_v58 }
 0xd01   : > { %v1404_v30 = vadd.f32 %v1776_v60, %v1397_v34 }
 0xd03   : > { %v1405_v61 = vpack.c.bf16 %v1404_v30, %v1404_v30 }
 0xd05   : > { %1912 = vmatmul.mubr.msk.bf16.vlgmr.msra.gmra.mxu1 %vm603_vm0, %v1405_v61 }
 0xdc5   : > { %v1466_v2 = vpop.f32.mrf.mxu1 }
 0xdc6   : > { %v1467_v3 = vadd.f32 %v1777_v1, %v1466_v2 }
 0xdc7   : > { %v1913_v4 = vpop.f32.mrf.mxu1 }
 0xdc8   : > { %v1472_v5 = vmax.f32 %v1467_v3, 0.0 }
 0xdc9   : > { %v1469_v6 = vpop.f32.mrf.mxu1 }
 0xdca   : > { %v1473_v7 = vpack.c.bf16 %v1472_v5, %v1472_v5 }
 0xdcb   : > { %v1914_v9 = vpop.f32.mrf.mxu1 }
 0xdcc   : > { %1924 = vmatmul.mubr.msk.bf16.vlgmr.msra.gmra.mxu0 %vm1513_vm5, %v1473_v7 }
 0xe8c   : > { %v1551_v10 = vpop.f32.mrf.mxu0 }
 0xe8d   : > { %v1552_v11 = vadd.f32 %v1781_v8, %v1551_v10 }
 0xe8e   : > { %v1925_v12 = vpop.f32.mrf.mxu0 }
 0xe8f   : > { %v1557_v13 = vadd.f32 %v1552_v11, %v1373_v42 }
 0xe90   : > { %v1554_v14 = vpop.f32.mrf.mxu0 }
 0xe91   : > { %1558 = vst.msk [vmem:[%s583_s15] sm:$0xff] %vm603_vm0, %v1557_v13 }
 0xe92   : > { %v1926_v15 = vpop.f32.mrf.mxu0 }
 0xe93   : > { %2288 = shalt.err (!%p2285_p7)
}
 0xe94   : > { %s2289_s19 = scalar_lea.hbm %s2784_s21, 128  ;;  %s2293_s20 = scalar_lea.hbm %s2876_s24, 256 }
 0xe95   : > { %p2290_p9 = scmp.ne.s32.totalorder %s2784_s21, %s2289_s19  ;;  %p2294_p2 = scmp.lt.s32.totalorder %s2784_s21, %s2876_s24 }
 0xe96   : > { %p2295_p3 = scmp.lt.s32.totalorder %s2293_s20, %s2289_s19 }
 0xe97   : > { %p2291_p12 = pnand %p2290_p9, %p2877_p8 }
 0xe98   : > { %p2296_p13 = por %p2295_p3, %p2294_p2 }
 0xe99   : > { %p2292_p1 = pneg %p2291_p12 }
 0xe9b   : > { %p2297_p0 = pnand %p2296_p13, %p2292_p1 }
 0xe9d   : > { %2300 = shalt.err (!%p2297_p0)
}
 0xe9e   : > { %1955 = dma.vmem_to_hbm [thread:$0]  (%p2877_p8), %s2786_s3, 128, %s2784_s21, %s1560_s16  }
 0xe9f PF: > { %s2878_s14 = sld [smem:[#allocation26_spill]] }
 0xea0   : > { %s2879_s26 = sld [smem:[#allocation23_spill]] }
 0xea1   : > { %s2880_s25 = sld [smem:[#allocation28_spill]] }
 0xea5   : > { %p1997_p5 = scmp.ge.s32.totalorder %s2878_s14, 2 }
 0xea6   : > { %s1586_s29 = sand.u32 1, %s2879_s26  }
 0xea7   : > { %p2881_p4 = scmp.ne.s32.totalorder %s2880_s25, 0  ;;  %s1587_s18 = scalar_lea.sflag [#allocation7], %s1586_s29 }
 0xea9   : > { %p1980_p10 = pnand %p1997_p5, %p2881_p4 }
 0xeab   : > { %p1981_p11 = pneg %p1980_p10 }
 0xead   : > { %2342 = dma.done.wait (%p1981_p11), %s1587_s18, 128  }
 0xeae   : > { %2344 = vsyncadd (%p1981_p11), %s1587_s18, 4294967168  ;;  %s31_s18 = sadd.s32 1, %s2878_s14   ;;  %s2882_s23 = sld [smem:[#allocation24_spill]] }
 0xeaf   : > { %p28_p6 = scmp.ge.s32.totalorder %s31_s18, 4   ;;  %s2883_s15 = sld [smem:[#allocation29_spill]] }
 0xeb0   : > { %s2884_s16 = sld [smem:[#allocation25_spill]]  ;;  %s2886_s29 = smov %s2351_s30 }
 0xeb1   : > { %s2885_s17 = sld [smem:[#allocation27_spill]]  ;;  %30 = sbr.rel (!%p28_p6) target bundleno = 11 (0xb), region = 149 }
 0xeb4   : > { %s2887_s30 = smov %s2882_s23 }
 0xeb6   :  { %1592 = vsyncpa [#allocation6], 1 }
 0xeb7   :  { %1594 = vsyncpa [#allocation6 + $0x1], 1 }
 0xeb8   :  { %1595 = vsyncpa [#allocation9], 1 }
 0xeb9   :  { %1596 = vsyncpa [#allocation12], 1 }
 0xeba   :  { %1597 = vsyncpa [#allocation15], 1 }
 0xebb   :  { %1598 = vsyncpa [#allocation7], 1 }
 0xebc   :  { %1600 = vsyncpa [#allocation7 + $0x1], 1 }

</bundles_post_ra>
